<compile_context>
chip_gen: v7x
topology: tpu7x:2x2x1
jax: 0.10.0
libtpu: 0.0.40
codegen_flags: <defaults>
</compile_context>

<pallas_src>
import math
from functools import partial

import jax
import jax.numpy as jnp
from jax import lax
from jax.experimental import pallas as pl
from jax.experimental.pallas import tpu as pltpu


def mha_kernel(x_ref, wq_ref, bq_ref, wk_ref, bk_ref, wv_ref, bv_ref,
               wc_ref, bc_ref, o_ref, *, n_head, seq_len, block_b):
    N = seq_len
    x = x_ref[...].astype(jnp.bfloat16)          # (block_b*N, D) packed rows

    acc = [None] * block_b                       # per-batch-element f32 accumulators
    for h in range(n_head):                      # static unrolled; ref[h] is free
        wq = wq_ref[h]                           # (D, D) bf16 (scale pre-folded)
        wk = wk_ref[h]
        wv = wv_ref[h]
        wc = wc_ref[h]
        # Row-packed per-head projections: (block_b*N, D) @ (D, D), f32 acc.
        q = (jnp.dot(x, wq, preferred_element_type=jnp.float32)
             + bq_ref[h]).astype(jnp.bfloat16)
        k = (jnp.dot(x, wk, preferred_element_type=jnp.float32)
             + bk_ref[h]).astype(jnp.bfloat16)
        v = (jnp.dot(x, wv, preferred_element_type=jnp.float32)
             + bv_ref[h]).astype(jnp.bfloat16)

        for b in range(block_b):                 # static unrolled, sublane-aligned slices
            rows = slice(b * N, (b + 1) * N)
            qh, kh, vh = q[rows], k[rows], v[rows]
            # Scores: contract the head dim directly (no explicit kh.T relayout).
            s = lax.dot_general(qh, kh, (((1,), (1,)), ((), ())),
                                preferred_element_type=jnp.float32)      # (N, N)
            m = jnp.max(s, axis=-1, keepdims=True)
            p = jnp.exp(s - m)                                           # f32 softmax numerator
            l = jnp.sum(p, axis=-1, keepdims=True)
            # Unnormalized P @ V; defer the normalization to the (N, D) result.
            pv = jnp.dot(p.astype(jnp.bfloat16), vh,
                         preferred_element_type=jnp.float32)             # (N, D)
            head_out = (pv * pl.reciprocal(l, approx=True)).astype(jnp.bfloat16)
            # Per-head output projection accumulation (replaces concat + big matmul).
            contrib = jnp.dot(head_out, wc, preferred_element_type=jnp.float32)
            acc[b] = contrib if acc[b] is None else acc[b] + contrib

    bc = bc_ref[...]                             # (1, D) f32, added once
    for b in range(block_b):
        o_ref[b * N:(b + 1) * N, :] = (acc[b] + bc).astype(o_ref.dtype)


def multi_head_attention(x, kparams, n_head, *, block_b=None):
    """x: (B, N, D) float32; kparams: output of prepare_kernel_params."""
    B, N, D = x.shape
    wq, bq, wk, bk, wv, bv, wc, bc = kparams

    if block_b is None:
        # Pack enough batch elements per grid step to feed the MXU row dim
        # (~256 rows), while keeping an exact tiling of B.
        block_b = max(1, min(B, pl.cdiv(256, N)))
        while B % block_b:
            block_b -= 1
    R = block_b * N

    # Flatten (B, N, D) -> (B*N, D) outside the kernel (free XLA reshape) so the
    # kernel sees lane-dense 2D row blocks and needs no in-kernel reshapes.
    x2 = x.reshape(B * N, D)

    kernel = partial(mha_kernel, n_head=n_head, seq_len=N, block_b=block_b)

    def const_spec(shape):
        nd = len(shape)
        return pl.BlockSpec(shape, lambda b, _n=nd: (0,) * _n)

    out2 = pl.pallas_call(
        kernel,
        out_shape=jax.ShapeDtypeStruct((B * N, D), x.dtype),
        grid=(B // block_b,),
        in_specs=[
            pl.BlockSpec((R, D), lambda b: (b, 0)),          # x rows
            const_spec(wq.shape), const_spec(bq.shape),       # w_q, b_q (per head)
            const_spec(wk.shape), const_spec(bk.shape),       # w_k, b_k
            const_spec(wv.shape), const_spec(bv.shape),       # w_v, b_v
            const_spec(wc.shape), const_spec(bc.shape),       # w_concat, b_concat
        ],
        out_specs=pl.BlockSpec((R, D), lambda b: (b, 0)),
        compiler_params=pltpu.CompilerParams(
            dimension_semantics=("parallel",),
            vmem_limit_bytes=32 * 1024 * 1024,
        ),
    )(x2, wq, bq, wk, bk, wv, bv, wc, bc)
    return out2.reshape(B, N, D)


def init_params(key, d_model, n_head):
    """Deterministic init matching nn.Linear shapes (weights stored transposed: (in, out))."""
    HD = d_model * n_head
    ks = jax.random.split(key, 8)

    def linear(kw, kb, fan_in, fan_out):
        bound = 1.0 / math.sqrt(fan_in)
        w = jax.random.uniform(kw, (fan_in, fan_out), jnp.float32, -bound, bound)
        b = jax.random.uniform(kb, (1, fan_out), jnp.float32, -bound, bound)
        return w, b

    wq, bq = linear(ks[0], ks[1], d_model, HD)
    wk, bk = linear(ks[2], ks[3], d_model, HD)
    wv, bv = linear(ks[4], ks[5], d_model, HD)
    wc, bc = linear(ks[6], ks[7], HD, d_model)
    return (wq, bq, wk, bk, wv, bv, wc, bc)


def prepare_kernel_params(params, d_model, n_head):
    """One-time param transform into kernel layout:
       - fold 1/sqrt(d_k) into the Q projection,
       - split fused (D, H*D) weights into per-head (H, D, D) tiles,
       - cast matmul weights to bf16 (biases stay f32)."""
    wq, bq, wk, bk, wv, bv, wc, bc = params
    H, D = n_head, d_model
    scale = 1.0 / math.sqrt(D)      # d_k == d_model per head in this module
    wq = wq * scale
    bq = bq * scale

    def split_w(w):                 # (D, H*D) -> (H, D, D)
        return jnp.asarray(w).reshape(D, H, D).transpose(1, 0, 2).astype(jnp.bfloat16)

    def split_b(b):                 # (1, H*D) -> (H, 1, D)
        return jnp.asarray(b).reshape(H, 1, D).astype(jnp.float32)

    wc_h = jnp.asarray(wc).reshape(H, D, D).astype(jnp.bfloat16)   # (H*D, D) -> (H, D, D)
    return (split_w(wq), split_b(bq), split_w(wk), split_b(bk),
            split_w(wv), split_b(bv), wc_h, jnp.asarray(bc).astype(jnp.float32))


def reference_mha(x, params, n_head):
    """Pure-JAX f32 reference of the PyTorch forward (mask=None)."""
    wq, bq, wk, bk, wv, bv, wc, bc = params
    B, N, D = x.shape
    q = x @ wq + bq
    k = x @ wk + bk
    v = x @ wv + bv
    split = lambda t: t.reshape(B, N, n_head, D).transpose(0, 2, 1, 3)  # b n (h d) -> b h n d
    q, k, v = split(q), split(k), split(v)
    s = jnp.einsum("bhnd,bhmd->bhnm", q, k) / math.sqrt(D)
    p = jax.nn.softmax(s, axis=-1)
    o = jnp.einsum("bhnm,bhmd->bhnd", p, v)
    o = o.transpose(0, 2, 1, 3).reshape(B, N, n_head * D)               # b h n d -> b n (h d)
    return o @ wc + bc


if __name__ == "__main__":
    B, N, d_model, n_head = 2, 8, 32, 4

    key = jax.random.PRNGKey(0)
    kx, kp = jax.random.split(key)
    x = jax.random.uniform(kx, (B, N, d_model), jnp.float32)

    params = init_params(kp, d_model, n_head)          # f32, PyTorch-layout (for reference)
    kparams = prepare_kernel_params(params, d_model, n_head)

    out = multi_head_attention(x, kparams, n_head)
    out = jax.block_until_ready(out)

    ref = reference_mha(x, params, n_head)
    assert out.shape == (B, N, d_model)
    # bf16 MXU matmuls + approx reciprocal -> loosened tolerance vs f32 reference.
    assert jnp.allclose(out, ref, atol=3e-2, rtol=3e-2), "mismatch vs reference"

    print("KERNEL_OK")
</pallas_src>

<mosaic_0001>
module attributes {stable_mosaic.version = 11 : i64} {
  func.func @mha_kernel(%arg0: i32, %arg1: memref<16x32xf32, #tpu.memory_space<vmem>>, %arg2: memref<4x32x32xbf16, #tpu.memory_space<vmem>>, %arg3: memref<4x1x32xf32, #tpu.memory_space<vmem>>, %arg4: memref<4x32x32xbf16, #tpu.memory_space<vmem>>, %arg5: memref<4x1x32xf32, #tpu.memory_space<vmem>>, %arg6: memref<4x32x32xbf16, #tpu.memory_space<vmem>>, %arg7: memref<4x1x32xf32, #tpu.memory_space<vmem>>, %arg8: memref<4x32x32xbf16, #tpu.memory_space<vmem>>, %arg9: memref<1x32xf32, #tpu.memory_space<vmem>>, %arg10: memref<16x32xf32, #tpu.memory_space<vmem>>) attributes {dimension_semantics = [#tpu.dimension_semantics<parallel>], iteration_bounds = array<i64: 1>, scalar_prefetch = 0 : i64, scratch_operands = 0 : i64, tpu.core_type = #tpu.core_type<tc>, window_params = [{transform_indices = @transform_0, window_bounds = array<i64: 16, 32>}, {pipeline_mode = #tpu.pipeline_mode<synchronous>, transform_indices = @transform_1, window_bounds = array<i64: 4, 32, 32>}, {pipeline_mode = #tpu.pipeline_mode<synchronous>, transform_indices = @transform_2, window_bounds = array<i64: 4, 1, 32>}, {pipeline_mode = #tpu.pipeline_mode<synchronous>, transform_indices = @transform_3, window_bounds = array<i64: 4, 32, 32>}, {pipeline_mode = #tpu.pipeline_mode<synchronous>, transform_indices = @transform_4, window_bounds = array<i64: 4, 1, 32>}, {pipeline_mode = #tpu.pipeline_mode<synchronous>, transform_indices = @transform_5, window_bounds = array<i64: 4, 32, 32>}, {pipeline_mode = #tpu.pipeline_mode<synchronous>, transform_indices = @transform_6, window_bounds = array<i64: 4, 1, 32>}, {pipeline_mode = #tpu.pipeline_mode<synchronous>, transform_indices = @transform_7, window_bounds = array<i64: 4, 32, 32>}, {pipeline_mode = #tpu.pipeline_mode<synchronous>, transform_indices = @transform_8, window_bounds = array<i64: 1, 32>}, {transform_indices = @transform_9, window_bounds = array<i64: 16, 32>}]} {
    %c0 = arith.constant 0 : index
    %c0_0 = arith.constant 0 : index
    %0 = vector.load %arg1[%c0, %c0_0] : memref<16x32xf32, #tpu.memory_space<vmem>>, vector<16x32xf32>
    %1 = arith.truncf %0 : vector<16x32xf32> to vector<16x32xbf16>
    %c0_1 = arith.constant 0 : index
    %c0_2 = arith.constant 0 : index
    %c0_3 = arith.constant 0 : index
    %2 = vector.load %arg2[%c0_1, %c0_2, %c0_3] : memref<4x32x32xbf16, #tpu.memory_space<vmem>>, vector<1x32x32xbf16>
    %3 = vector.shape_cast %2 : vector<1x32x32xbf16> to vector<32x32xbf16>
    %c0_4 = arith.constant 0 : index
    %c0_5 = arith.constant 0 : index
    %c0_6 = arith.constant 0 : index
    %4 = vector.load %arg4[%c0_4, %c0_5, %c0_6] : memref<4x32x32xbf16, #tpu.memory_space<vmem>>, vector<1x32x32xbf16>
    %5 = vector.shape_cast %4 : vector<1x32x32xbf16> to vector<32x32xbf16>
    %c0_7 = arith.constant 0 : index
    %c0_8 = arith.constant 0 : index
    %c0_9 = arith.constant 0 : index
    %6 = vector.load %arg6[%c0_7, %c0_8, %c0_9] : memref<4x32x32xbf16, #tpu.memory_space<vmem>>, vector<1x32x32xbf16>
    %7 = vector.shape_cast %6 : vector<1x32x32xbf16> to vector<32x32xbf16>
    %c0_10 = arith.constant 0 : index
    %c0_11 = arith.constant 0 : index
    %c0_12 = arith.constant 0 : index
    %8 = vector.load %arg8[%c0_10, %c0_11, %c0_12] : memref<4x32x32xbf16, #tpu.memory_space<vmem>>, vector<1x32x32xbf16>
    %9 = vector.shape_cast %8 : vector<1x32x32xbf16> to vector<32x32xbf16>
    %cst = arith.constant dense<0.000000e+00> : vector<16x32xf32>
    %10 = tpu.matmul %1, %3, %cst {dimension_numbers = #tpu.dot_dimension_numbers<[1], [0], [0], [1], [0, 0, 1, 1], [], []>} : vector<16x32xbf16>, vector<32x32xbf16>, vector<16x32xf32> -> vector<16x32xf32>
    %c0_13 = arith.constant 0 : index
    %c0_14 = arith.constant 0 : index
    %c0_15 = arith.constant 0 : index
    %11 = vector.load %arg3[%c0_13, %c0_14, %c0_15] : memref<4x1x32xf32, #tpu.memory_space<vmem>>, vector<1x1x32xf32>
    %12 = vector.shape_cast %11 : vector<1x1x32xf32> to vector<1x32xf32>
    %13 = vector.broadcast %12 : vector<1x32xf32> to vector<16x32xf32>
    %14 = arith.addf %10, %13 : vector<16x32xf32>
    %15 = arith.truncf %14 : vector<16x32xf32> to vector<16x32xbf16>
    %cst_16 = arith.constant dense<0.000000e+00> : vector<16x32xf32>
    %16 = tpu.matmul %1, %5, %cst_16 {dimension_numbers = #tpu.dot_dimension_numbers<[1], [0], [0], [1], [0, 0, 1, 1], [], []>} : vector<16x32xbf16>, vector<32x32xbf16>, vector<16x32xf32> -> vector<16x32xf32>
    %c0_17 = arith.constant 0 : index
    %c0_18 = arith.constant 0 : index
    %c0_19 = arith.constant 0 : index
    %17 = vector.load %arg5[%c0_17, %c0_18, %c0_19] : memref<4x1x32xf32, #tpu.memory_space<vmem>>, vector<1x1x32xf32>
    %18 = vector.shape_cast %17 : vector<1x1x32xf32> to vector<1x32xf32>
    %19 = vector.broadcast %18 : vector<1x32xf32> to vector<16x32xf32>
    %20 = arith.addf %16, %19 : vector<16x32xf32>
    %21 = arith.truncf %20 : vector<16x32xf32> to vector<16x32xbf16>
    %cst_20 = arith.constant dense<0.000000e+00> : vector<16x32xf32>
    %22 = tpu.matmul %1, %7, %cst_20 {dimension_numbers = #tpu.dot_dimension_numbers<[1], [0], [0], [1], [0, 0, 1, 1], [], []>} : vector<16x32xbf16>, vector<32x32xbf16>, vector<16x32xf32> -> vector<16x32xf32>
    %c0_21 = arith.constant 0 : index
    %c0_22 = arith.constant 0 : index
    %c0_23 = arith.constant 0 : index
    %23 = vector.load %arg7[%c0_21, %c0_22, %c0_23] : memref<4x1x32xf32, #tpu.memory_space<vmem>>, vector<1x1x32xf32>
    %24 = vector.shape_cast %23 : vector<1x1x32xf32> to vector<1x32xf32>
    %25 = vector.broadcast %24 : vector<1x32xf32> to vector<16x32xf32>
    %26 = arith.addf %22, %25 : vector<16x32xf32>
    %27 = arith.truncf %26 : vector<16x32xf32> to vector<16x32xbf16>
    %28 = vector.extract_strided_slice %15 {offsets = [0, 0], sizes = [8, 32], strides = [1, 1]} : vector<16x32xbf16> to vector<8x32xbf16>
    %29 = vector.extract_strided_slice %21 {offsets = [0, 0], sizes = [8, 32], strides = [1, 1]} : vector<16x32xbf16> to vector<8x32xbf16>
    %30 = vector.extract_strided_slice %27 {offsets = [0, 0], sizes = [8, 32], strides = [1, 1]} : vector<16x32xbf16> to vector<8x32xbf16>
    %cst_24 = arith.constant dense<0.000000e+00> : vector<8x8xf32>
    %31 = tpu.matmul %28, %29, %cst_24 {dimension_numbers = #tpu.dot_dimension_numbers<[1], [1], [0], [0], [0, 0, 1, 0], [], []>} : vector<8x32xbf16>, vector<8x32xbf16>, vector<8x8xf32> -> vector<8x8xf32>
    %cst_25 = arith.constant dense<0xFF800000> : vector<8xf32>
    %32 = vector.multi_reduction <maximumf>, %31, %cst_25 [1] : vector<8x8xf32> to vector<8xf32>
    %33 = vector.shape_cast %32 : vector<8xf32> to vector<8x1xf32>
    %34 = vector.broadcast %33 : vector<8x1xf32> to vector<8x8xf32>
    %35 = arith.subf %31, %34 : vector<8x8xf32>
    %36 = math.exp %35 : vector<8x8xf32>
    %cst_26 = arith.constant dense<0.000000e+00> : vector<8xf32>
    %37 = vector.multi_reduction <add>, %36, %cst_26 [1] : vector<8x8xf32> to vector<8xf32>
    %38 = vector.shape_cast %37 : vector<8xf32> to vector<8x1xf32>
    %39 = arith.truncf %36 : vector<8x8xf32> to vector<8x8xbf16>
    %cst_27 = arith.constant dense<0.000000e+00> : vector<8x32xf32>
    %40 = tpu.matmul %39, %30, %cst_27 {dimension_numbers = #tpu.dot_dimension_numbers<[1], [0], [0], [1], [0, 0, 1, 1], [], []>} : vector<8x8xbf16>, vector<8x32xbf16>, vector<8x32xf32> -> vector<8x32xf32>
    %41 = tpu.reciprocal %38 {approx = true} : vector<8x1xf32> -> vector<8x1xf32>
    %42 = vector.broadcast %41 : vector<8x1xf32> to vector<8x32xf32>
    %43 = arith.mulf %40, %42 : vector<8x32xf32>
    %44 = arith.truncf %43 : vector<8x32xf32> to vector<8x32xbf16>
    %cst_28 = arith.constant dense<0.000000e+00> : vector<8x32xf32>
    %45 = tpu.matmul %44, %9, %cst_28 {dimension_numbers = #tpu.dot_dimension_numbers<[1], [0], [0], [1], [0, 0, 1, 1], [], []>} : vector<8x32xbf16>, vector<32x32xbf16>, vector<8x32xf32> -> vector<8x32xf32>
    %46 = vector.extract_strided_slice %15 {offsets = [8, 0], sizes = [8, 32], strides = [1, 1]} : vector<16x32xbf16> to vector<8x32xbf16>
    %47 = vector.extract_strided_slice %21 {offsets = [8, 0], sizes = [8, 32], strides = [1, 1]} : vector<16x32xbf16> to vector<8x32xbf16>
    %48 = vector.extract_strided_slice %27 {offsets = [8, 0], sizes = [8, 32], strides = [1, 1]} : vector<16x32xbf16> to vector<8x32xbf16>
    %cst_29 = arith.constant dense<0.000000e+00> : vector<8x8xf32>
    %49 = tpu.matmul %46, %47, %cst_29 {dimension_numbers = #tpu.dot_dimension_numbers<[1], [1], [0], [0], [0, 0, 1, 0], [], []>} : vector<8x32xbf16>, vector<8x32xbf16>, vector<8x8xf32> -> vector<8x8xf32>
    %cst_30 = arith.constant dense<0xFF800000> : vector<8xf32>
    %50 = vector.multi_reduction <maximumf>, %49, %cst_30 [1] : vector<8x8xf32> to vector<8xf32>
    %51 = vector.shape_cast %50 : vector<8xf32> to vector<8x1xf32>
    %52 = vector.broadcast %51 : vector<8x1xf32> to vector<8x8xf32>
    %53 = arith.subf %49, %52 : vector<8x8xf32>
    %54 = math.exp %53 : vector<8x8xf32>
    %cst_31 = arith.constant dense<0.000000e+00> : vector<8xf32>
    %55 = vector.multi_reduction <add>, %54, %cst_31 [1] : vector<8x8xf32> to vector<8xf32>
    %56 = vector.shape_cast %55 : vector<8xf32> to vector<8x1xf32>
    %57 = arith.truncf %54 : vector<8x8xf32> to vector<8x8xbf16>
    %cst_32 = arith.constant dense<0.000000e+00> : vector<8x32xf32>
    %58 = tpu.matmul %57, %48, %cst_32 {dimension_numbers = #tpu.dot_dimension_numbers<[1], [0], [0], [1], [0, 0, 1, 1], [], []>} : vector<8x8xbf16>, vector<8x32xbf16>, vector<8x32xf32> -> vector<8x32xf32>
    %59 = tpu.reciprocal %56 {approx = true} : vector<8x1xf32> -> vector<8x1xf32>
    %60 = vector.broadcast %59 : vector<8x1xf32> to vector<8x32xf32>
    %61 = arith.mulf %58, %60 : vector<8x32xf32>
    %62 = arith.truncf %61 : vector<8x32xf32> to vector<8x32xbf16>
    %cst_33 = arith.constant dense<0.000000e+00> : vector<8x32xf32>
    %63 = tpu.matmul %62, %9, %cst_33 {dimension_numbers = #tpu.dot_dimension_numbers<[1], [0], [0], [1], [0, 0, 1, 1], [], []>} : vector<8x32xbf16>, vector<32x32xbf16>, vector<8x32xf32> -> vector<8x32xf32>
    %c1 = arith.constant 1 : index
    %c0_34 = arith.constant 0 : index
    %c0_35 = arith.constant 0 : index
    %64 = vector.load %arg2[%c1, %c0_34, %c0_35] : memref<4x32x32xbf16, #tpu.memory_space<vmem>>, vector<1x32x32xbf16>
    %65 = vector.shape_cast %64 : vector<1x32x32xbf16> to vector<32x32xbf16>
    %c1_36 = arith.constant 1 : index
    %c0_37 = arith.constant 0 : index
    %c0_38 = arith.constant 0 : index
    %66 = vector.load %arg4[%c1_36, %c0_37, %c0_38] : memref<4x32x32xbf16, #tpu.memory_space<vmem>>, vector<1x32x32xbf16>
    %67 = vector.shape_cast %66 : vector<1x32x32xbf16> to vector<32x32xbf16>
    %c1_39 = arith.constant 1 : index
    %c0_40 = arith.constant 0 : index
    %c0_41 = arith.constant 0 : index
    %68 = vector.load %arg6[%c1_39, %c0_40, %c0_41] : memref<4x32x32xbf16, #tpu.memory_space<vmem>>, vector<1x32x32xbf16>
    %69 = vector.shape_cast %68 : vector<1x32x32xbf16> to vector<32x32xbf16>
    %c1_42 = arith.constant 1 : index
    %c0_43 = arith.constant 0 : index
    %c0_44 = arith.constant 0 : index
    %70 = vector.load %arg8[%c1_42, %c0_43, %c0_44] : memref<4x32x32xbf16, #tpu.memory_space<vmem>>, vector<1x32x32xbf16>
    %71 = vector.shape_cast %70 : vector<1x32x32xbf16> to vector<32x32xbf16>
    %cst_45 = arith.constant dense<0.000000e+00> : vector<16x32xf32>
    %72 = tpu.matmul %1, %65, %cst_45 {dimension_numbers = #tpu.dot_dimension_numbers<[1], [0], [0], [1], [0, 0, 1, 1], [], []>} : vector<16x32xbf16>, vector<32x32xbf16>, vector<16x32xf32> -> vector<16x32xf32>
    %c1_46 = arith.constant 1 : index
    %c0_47 = arith.constant 0 : index
    %c0_48 = arith.constant 0 : index
    %73 = vector.load %arg3[%c1_46, %c0_47, %c0_48] : memref<4x1x32xf32, #tpu.memory_space<vmem>>, vector<1x1x32xf32>
    %74 = vector.shape_cast %73 : vector<1x1x32xf32> to vector<1x32xf32>
    %75 = vector.broadcast %74 : vector<1x32xf32> to vector<16x32xf32>
    %76 = arith.addf %72, %75 : vector<16x32xf32>
    %77 = arith.truncf %76 : vector<16x32xf32> to vector<16x32xbf16>
    %cst_49 = arith.constant dense<0.000000e+00> : vector<16x32xf32>
    %78 = tpu.matmul %1, %67, %cst_49 {dimension_numbers = #tpu.dot_dimension_numbers<[1], [0], [0], [1], [0, 0, 1, 1], [], []>} : vector<16x32xbf16>, vector<32x32xbf16>, vector<16x32xf32> -> vector<16x32xf32>
    %c1_50 = arith.constant 1 : index
    %c0_51 = arith.constant 0 : index
    %c0_52 = arith.constant 0 : index
    %79 = vector.load %arg5[%c1_50, %c0_51, %c0_52] : memref<4x1x32xf32, #tpu.memory_space<vmem>>, vector<1x1x32xf32>
    %80 = vector.shape_cast %79 : vector<1x1x32xf32> to vector<1x32xf32>
    %81 = vector.broadcast %80 : vector<1x32xf32> to vector<16x32xf32>
    %82 = arith.addf %78, %81 : vector<16x32xf32>
    %83 = arith.truncf %82 : vector<16x32xf32> to vector<16x32xbf16>
    %cst_53 = arith.constant dense<0.000000e+00> : vector<16x32xf32>
    %84 = tpu.matmul %1, %69, %cst_53 {dimension_numbers = #tpu.dot_dimension_numbers<[1], [0], [0], [1], [0, 0, 1, 1], [], []>} : vector<16x32xbf16>, vector<32x32xbf16>, vector<16x32xf32> -> vector<16x32xf32>
    %c1_54 = arith.constant 1 : index
    %c0_55 = arith.constant 0 : index
    %c0_56 = arith.constant 0 : index
    %85 = vector.load %arg7[%c1_54, %c0_55, %c0_56] : memref<4x1x32xf32, #tpu.memory_space<vmem>>, vector<1x1x32xf32>
    %86 = vector.shape_cast %85 : vector<1x1x32xf32> to vector<1x32xf32>
    %87 = vector.broadcast %86 : vector<1x32xf32> to vector<16x32xf32>
    %88 = arith.addf %84, %87 : vector<16x32xf32>
    %89 = arith.truncf %88 : vector<16x32xf32> to vector<16x32xbf16>
    %90 = vector.extract_strided_slice %77 {offsets = [0, 0], sizes = [8, 32], strides = [1, 1]} : vector<16x32xbf16> to vector<8x32xbf16>
    %91 = vector.extract_strided_slice %83 {offsets = [0, 0], sizes = [8, 32], strides = [1, 1]} : vector<16x32xbf16> to vector<8x32xbf16>
    %92 = vector.extract_strided_slice %89 {offsets = [0, 0], sizes = [8, 32], strides = [1, 1]} : vector<16x32xbf16> to vector<8x32xbf16>
    %cst_57 = arith.constant dense<0.000000e+00> : vector<8x8xf32>
    %93 = tpu.matmul %90, %91, %cst_57 {dimension_numbers = #tpu.dot_dimension_numbers<[1], [1], [0], [0], [0, 0, 1, 0], [], []>} : vector<8x32xbf16>, vector<8x32xbf16>, vector<8x8xf32> -> vector<8x8xf32>
    %cst_58 = arith.constant dense<0xFF800000> : vector<8xf32>
    %94 = vector.multi_reduction <maximumf>, %93, %cst_58 [1] : vector<8x8xf32> to vector<8xf32>
    %95 = vector.shape_cast %94 : vector<8xf32> to vector<8x1xf32>
    %96 = vector.broadcast %95 : vector<8x1xf32> to vector<8x8xf32>
    %97 = arith.subf %93, %96 : vector<8x8xf32>
    %98 = math.exp %97 : vector<8x8xf32>
    %cst_59 = arith.constant dense<0.000000e+00> : vector<8xf32>
    %99 = vector.multi_reduction <add>, %98, %cst_59 [1] : vector<8x8xf32> to vector<8xf32>
    %100 = vector.shape_cast %99 : vector<8xf32> to vector<8x1xf32>
    %101 = arith.truncf %98 : vector<8x8xf32> to vector<8x8xbf16>
    %cst_60 = arith.constant dense<0.000000e+00> : vector<8x32xf32>
    %102 = tpu.matmul %101, %92, %cst_60 {dimension_numbers = #tpu.dot_dimension_numbers<[1], [0], [0], [1], [0, 0, 1, 1], [], []>} : vector<8x8xbf16>, vector<8x32xbf16>, vector<8x32xf32> -> vector<8x32xf32>
    %103 = tpu.reciprocal %100 {approx = true} : vector<8x1xf32> -> vector<8x1xf32>
    %104 = vector.broadcast %103 : vector<8x1xf32> to vector<8x32xf32>
    %105 = arith.mulf %102, %104 : vector<8x32xf32>
    %106 = arith.truncf %105 : vector<8x32xf32> to vector<8x32xbf16>
    %cst_61 = arith.constant dense<0.000000e+00> : vector<8x32xf32>
    %107 = tpu.matmul %106, %71, %cst_61 {dimension_numbers = #tpu.dot_dimension_numbers<[1], [0], [0], [1], [0, 0, 1, 1], [], []>} : vector<8x32xbf16>, vector<32x32xbf16>, vector<8x32xf32> -> vector<8x32xf32>
    %108 = arith.addf %45, %107 : vector<8x32xf32>
    %109 = vector.extract_strided_slice %77 {offsets = [8, 0], sizes = [8, 32], strides = [1, 1]} : vector<16x32xbf16> to vector<8x32xbf16>
    %110 = vector.extract_strided_slice %83 {offsets = [8, 0], sizes = [8, 32], strides = [1, 1]} : vector<16x32xbf16> to vector<8x32xbf16>
    %111 = vector.extract_strided_slice %89 {offsets = [8, 0], sizes = [8, 32], strides = [1, 1]} : vector<16x32xbf16> to vector<8x32xbf16>
    %cst_62 = arith.constant dense<0.000000e+00> : vector<8x8xf32>
    %112 = tpu.matmul %109, %110, %cst_62 {dimension_numbers = #tpu.dot_dimension_numbers<[1], [1], [0], [0], [0, 0, 1, 0], [], []>} : vector<8x32xbf16>, vector<8x32xbf16>, vector<8x8xf32> -> vector<8x8xf32>
    %cst_63 = arith.constant dense<0xFF800000> : vector<8xf32>
    %113 = vector.multi_reduction <maximumf>, %112, %cst_63 [1] : vector<8x8xf32> to vector<8xf32>
    %114 = vector.shape_cast %113 : vector<8xf32> to vector<8x1xf32>
    %115 = vector.broadcast %114 : vector<8x1xf32> to vector<8x8xf32>
    %116 = arith.subf %112, %115 : vector<8x8xf32>
    %117 = math.exp %116 : vector<8x8xf32>
    %cst_64 = arith.constant dense<0.000000e+00> : vector<8xf32>
    %118 = vector.multi_reduction <add>, %117, %cst_64 [1] : vector<8x8xf32> to vector<8xf32>
    %119 = vector.shape_cast %118 : vector<8xf32> to vector<8x1xf32>
    %120 = arith.truncf %117 : vector<8x8xf32> to vector<8x8xbf16>
    %cst_65 = arith.constant dense<0.000000e+00> : vector<8x32xf32>
    %121 = tpu.matmul %120, %111, %cst_65 {dimension_numbers = #tpu.dot_dimension_numbers<[1], [0], [0], [1], [0, 0, 1, 1], [], []>} : vector<8x8xbf16>, vector<8x32xbf16>, vector<8x32xf32> -> vector<8x32xf32>
    %122 = tpu.reciprocal %119 {approx = true} : vector<8x1xf32> -> vector<8x1xf32>
    %123 = vector.broadcast %122 : vector<8x1xf32> to vector<8x32xf32>
    %124 = arith.mulf %121, %123 : vector<8x32xf32>
    %125 = arith.truncf %124 : vector<8x32xf32> to vector<8x32xbf16>
    %cst_66 = arith.constant dense<0.000000e+00> : vector<8x32xf32>
    %126 = tpu.matmul %125, %71, %cst_66 {dimension_numbers = #tpu.dot_dimension_numbers<[1], [0], [0], [1], [0, 0, 1, 1], [], []>} : vector<8x32xbf16>, vector<32x32xbf16>, vector<8x32xf32> -> vector<8x32xf32>
    %127 = arith.addf %63, %126 : vector<8x32xf32>
    %c2 = arith.constant 2 : index
    %c0_67 = arith.constant 0 : index
    %c0_68 = arith.constant 0 : index
    %128 = vector.load %arg2[%c2, %c0_67, %c0_68] : memref<4x32x32xbf16, #tpu.memory_space<vmem>>, vector<1x32x32xbf16>
    %129 = vector.shape_cast %128 : vector<1x32x32xbf16> to vector<32x32xbf16>
    %c2_69 = arith.constant 2 : index
    %c0_70 = arith.constant 0 : index
    %c0_71 = arith.constant 0 : index
    %130 = vector.load %arg4[%c2_69, %c0_70, %c0_71] : memref<4x32x32xbf16, #tpu.memory_space<vmem>>, vector<1x32x32xbf16>
    %131 = vector.shape_cast %130 : vector<1x32x32xbf16> to vector<32x32xbf16>
    %c2_72 = arith.constant 2 : index
    %c0_73 = arith.constant 0 : index
    %c0_74 = arith.constant 0 : index
    %132 = vector.load %arg6[%c2_72, %c0_73, %c0_74] : memref<4x32x32xbf16, #tpu.memory_space<vmem>>, vector<1x32x32xbf16>
    %133 = vector.shape_cast %132 : vector<1x32x32xbf16> to vector<32x32xbf16>
    %c2_75 = arith.constant 2 : index
    %c0_76 = arith.constant 0 : index
    %c0_77 = arith.constant 0 : index
    %134 = vector.load %arg8[%c2_75, %c0_76, %c0_77] : memref<4x32x32xbf16, #tpu.memory_space<vmem>>, vector<1x32x32xbf16>
    %135 = vector.shape_cast %134 : vector<1x32x32xbf16> to vector<32x32xbf16>
    %cst_78 = arith.constant dense<0.000000e+00> : vector<16x32xf32>
    %136 = tpu.matmul %1, %129, %cst_78 {dimension_numbers = #tpu.dot_dimension_numbers<[1], [0], [0], [1], [0, 0, 1, 1], [], []>} : vector<16x32xbf16>, vector<32x32xbf16>, vector<16x32xf32> -> vector<16x32xf32>
    %c2_79 = arith.constant 2 : index
    %c0_80 = arith.constant 0 : index
    %c0_81 = arith.constant 0 : index
    %137 = vector.load %arg3[%c2_79, %c0_80, %c0_81] : memref<4x1x32xf32, #tpu.memory_space<vmem>>, vector<1x1x32xf32>
    %138 = vector.shape_cast %137 : vector<1x1x32xf32> to vector<1x32xf32>
    %139 = vector.broadcast %138 : vector<1x32xf32> to vector<16x32xf32>
    %140 = arith.addf %136, %139 : vector<16x32xf32>
    %141 = arith.truncf %140 : vector<16x32xf32> to vector<16x32xbf16>
    %cst_82 = arith.constant dense<0.000000e+00> : vector<16x32xf32>
    %142 = tpu.matmul %1, %131, %cst_82 {dimension_numbers = #tpu.dot_dimension_numbers<[1], [0], [0], [1], [0, 0, 1, 1], [], []>} : vector<16x32xbf16>, vector<32x32xbf16>, vector<16x32xf32> -> vector<16x32xf32>
    %c2_83 = arith.constant 2 : index
    %c0_84 = arith.constant 0 : index
    %c0_85 = arith.constant 0 : index
    %143 = vector.load %arg5[%c2_83, %c0_84, %c0_85] : memref<4x1x32xf32, #tpu.memory_space<vmem>>, vector<1x1x32xf32>
    %144 = vector.shape_cast %143 : vector<1x1x32xf32> to vector<1x32xf32>
    %145 = vector.broadcast %144 : vector<1x32xf32> to vector<16x32xf32>
    %146 = arith.addf %142, %145 : vector<16x32xf32>
    %147 = arith.truncf %146 : vector<16x32xf32> to vector<16x32xbf16>
    %cst_86 = arith.constant dense<0.000000e+00> : vector<16x32xf32>
    %148 = tpu.matmul %1, %133, %cst_86 {dimension_numbers = #tpu.dot_dimension_numbers<[1], [0], [0], [1], [0, 0, 1, 1], [], []>} : vector<16x32xbf16>, vector<32x32xbf16>, vector<16x32xf32> -> vector<16x32xf32>
    %c2_87 = arith.constant 2 : index
    %c0_88 = arith.constant 0 : index
    %c0_89 = arith.constant 0 : index
    %149 = vector.load %arg7[%c2_87, %c0_88, %c0_89] : memref<4x1x32xf32, #tpu.memory_space<vmem>>, vector<1x1x32xf32>
    %150 = vector.shape_cast %149 : vector<1x1x32xf32> to vector<1x32xf32>
    %151 = vector.broadcast %150 : vector<1x32xf32> to vector<16x32xf32>
    %152 = arith.addf %148, %151 : vector<16x32xf32>
    %153 = arith.truncf %152 : vector<16x32xf32> to vector<16x32xbf16>
    %154 = vector.extract_strided_slice %141 {offsets = [0, 0], sizes = [8, 32], strides = [1, 1]} : vector<16x32xbf16> to vector<8x32xbf16>
    %155 = vector.extract_strided_slice %147 {offsets = [0, 0], sizes = [8, 32], strides = [1, 1]} : vector<16x32xbf16> to vector<8x32xbf16>
    %156 = vector.extract_strided_slice %153 {offsets = [0, 0], sizes = [8, 32], strides = [1, 1]} : vector<16x32xbf16> to vector<8x32xbf16>
    %cst_90 = arith.constant dense<0.000000e+00> : vector<8x8xf32>
    %157 = tpu.matmul %154, %155, %cst_90 {dimension_numbers = #tpu.dot_dimension_numbers<[1], [1], [0], [0], [0, 0, 1, 0], [], []>} : vector<8x32xbf16>, vector<8x32xbf16>, vector<8x8xf32> -> vector<8x8xf32>
    %cst_91 = arith.constant dense<0xFF800000> : vector<8xf32>
    %158 = vector.multi_reduction <maximumf>, %157, %cst_91 [1] : vector<8x8xf32> to vector<8xf32>
    %159 = vector.shape_cast %158 : vector<8xf32> to vector<8x1xf32>
    %160 = vector.broadcast %159 : vector<8x1xf32> to vector<8x8xf32>
    %161 = arith.subf %157, %160 : vector<8x8xf32>
    %162 = math.exp %161 : vector<8x8xf32>
    %cst_92 = arith.constant dense<0.000000e+00> : vector<8xf32>
    %163 = vector.multi_reduction <add>, %162, %cst_92 [1] : vector<8x8xf32> to vector<8xf32>
    %164 = vector.shape_cast %163 : vector<8xf32> to vector<8x1xf32>
    %165 = arith.truncf %162 : vector<8x8xf32> to vector<8x8xbf16>
    %cst_93 = arith.constant dense<0.000000e+00> : vector<8x32xf32>
    %166 = tpu.matmul %165, %156, %cst_93 {dimension_numbers = #tpu.dot_dimension_numbers<[1], [0], [0], [1], [0, 0, 1, 1], [], []>} : vector<8x8xbf16>, vector<8x32xbf16>, vector<8x32xf32> -> vector<8x32xf32>
    %167 = tpu.reciprocal %164 {approx = true} : vector<8x1xf32> -> vector<8x1xf32>
    %168 = vector.broadcast %167 : vector<8x1xf32> to vector<8x32xf32>
    %169 = arith.mulf %166, %168 : vector<8x32xf32>
    %170 = arith.truncf %169 : vector<8x32xf32> to vector<8x32xbf16>
    %cst_94 = arith.constant dense<0.000000e+00> : vector<8x32xf32>
    %171 = tpu.matmul %170, %135, %cst_94 {dimension_numbers = #tpu.dot_dimension_numbers<[1], [0], [0], [1], [0, 0, 1, 1], [], []>} : vector<8x32xbf16>, vector<32x32xbf16>, vector<8x32xf32> -> vector<8x32xf32>
    %172 = arith.addf %108, %171 : vector<8x32xf32>
    %173 = vector.extract_strided_slice %141 {offsets = [8, 0], sizes = [8, 32], strides = [1, 1]} : vector<16x32xbf16> to vector<8x32xbf16>
    %174 = vector.extract_strided_slice %147 {offsets = [8, 0], sizes = [8, 32], strides = [1, 1]} : vector<16x32xbf16> to vector<8x32xbf16>
    %175 = vector.extract_strided_slice %153 {offsets = [8, 0], sizes = [8, 32], strides = [1, 1]} : vector<16x32xbf16> to vector<8x32xbf16>
    %cst_95 = arith.constant dense<0.000000e+00> : vector<8x8xf32>
    %176 = tpu.matmul %173, %174, %cst_95 {dimension_numbers = #tpu.dot_dimension_numbers<[1], [1], [0], [0], [0, 0, 1, 0], [], []>} : vector<8x32xbf16>, vector<8x32xbf16>, vector<8x8xf32> -> vector<8x8xf32>
    %cst_96 = arith.constant dense<0xFF800000> : vector<8xf32>
    %177 = vector.multi_reduction <maximumf>, %176, %cst_96 [1] : vector<8x8xf32> to vector<8xf32>
    %178 = vector.shape_cast %177 : vector<8xf32> to vector<8x1xf32>
    %179 = vector.broadcast %178 : vector<8x1xf32> to vector<8x8xf32>
    %180 = arith.subf %176, %179 : vector<8x8xf32>
    %181 = math.exp %180 : vector<8x8xf32>
    %cst_97 = arith.constant dense<0.000000e+00> : vector<8xf32>
    %182 = vector.multi_reduction <add>, %181, %cst_97 [1] : vector<8x8xf32> to vector<8xf32>
    %183 = vector.shape_cast %182 : vector<8xf32> to vector<8x1xf32>
    %184 = arith.truncf %181 : vector<8x8xf32> to vector<8x8xbf16>
    %cst_98 = arith.constant dense<0.000000e+00> : vector<8x32xf32>
    %185 = tpu.matmul %184, %175, %cst_98 {dimension_numbers = #tpu.dot_dimension_numbers<[1], [0], [0], [1], [0, 0, 1, 1], [], []>} : vector<8x8xbf16>, vector<8x32xbf16>, vector<8x32xf32> -> vector<8x32xf32>
    %186 = tpu.reciprocal %183 {approx = true} : vector<8x1xf32> -> vector<8x1xf32>
    %187 = vector.broadcast %186 : vector<8x1xf32> to vector<8x32xf32>
    %188 = arith.mulf %185, %187 : vector<8x32xf32>
    %189 = arith.truncf %188 : vector<8x32xf32> to vector<8x32xbf16>
    %cst_99 = arith.constant dense<0.000000e+00> : vector<8x32xf32>
    %190 = tpu.matmul %189, %135, %cst_99 {dimension_numbers = #tpu.dot_dimension_numbers<[1], [0], [0], [1], [0, 0, 1, 1], [], []>} : vector<8x32xbf16>, vector<32x32xbf16>, vector<8x32xf32> -> vector<8x32xf32>
    %191 = arith.addf %127, %190 : vector<8x32xf32>
    %c3 = arith.constant 3 : index
    %c0_100 = arith.constant 0 : index
    %c0_101 = arith.constant 0 : index
    %192 = vector.load %arg2[%c3, %c0_100, %c0_101] : memref<4x32x32xbf16, #tpu.memory_space<vmem>>, vector<1x32x32xbf16>
    %193 = vector.shape_cast %192 : vector<1x32x32xbf16> to vector<32x32xbf16>
    %c3_102 = arith.constant 3 : index
    %c0_103 = arith.constant 0 : index
    %c0_104 = arith.constant 0 : index
    %194 = vector.load %arg4[%c3_102, %c0_103, %c0_104] : memref<4x32x32xbf16, #tpu.memory_space<vmem>>, vector<1x32x32xbf16>
    %195 = vector.shape_cast %194 : vector<1x32x32xbf16> to vector<32x32xbf16>
    %c3_105 = arith.constant 3 : index
    %c0_106 = arith.constant 0 : index
    %c0_107 = arith.constant 0 : index
    %196 = vector.load %arg6[%c3_105, %c0_106, %c0_107] : memref<4x32x32xbf16, #tpu.memory_space<vmem>>, vector<1x32x32xbf16>
    %197 = vector.shape_cast %196 : vector<1x32x32xbf16> to vector<32x32xbf16>
    %c3_108 = arith.constant 3 : index
    %c0_109 = arith.constant 0 : index
    %c0_110 = arith.constant 0 : index
    %198 = vector.load %arg8[%c3_108, %c0_109, %c0_110] : memref<4x32x32xbf16, #tpu.memory_space<vmem>>, vector<1x32x32xbf16>
    %199 = vector.shape_cast %198 : vector<1x32x32xbf16> to vector<32x32xbf16>
    %cst_111 = arith.constant dense<0.000000e+00> : vector<16x32xf32>
    %200 = tpu.matmul %1, %193, %cst_111 {dimension_numbers = #tpu.dot_dimension_numbers<[1], [0], [0], [1], [0, 0, 1, 1], [], []>} : vector<16x32xbf16>, vector<32x32xbf16>, vector<16x32xf32> -> vector<16x32xf32>
    %c3_112 = arith.constant 3 : index
    %c0_113 = arith.constant 0 : index
    %c0_114 = arith.constant 0 : index
    %201 = vector.load %arg3[%c3_112, %c0_113, %c0_114] : memref<4x1x32xf32, #tpu.memory_space<vmem>>, vector<1x1x32xf32>
    %202 = vector.shape_cast %201 : vector<1x1x32xf32> to vector<1x32xf32>
    %203 = vector.broadcast %202 : vector<1x32xf32> to vector<16x32xf32>
    %204 = arith.addf %200, %203 : vector<16x32xf32>
    %205 = arith.truncf %204 : vector<16x32xf32> to vector<16x32xbf16>
    %cst_115 = arith.constant dense<0.000000e+00> : vector<16x32xf32>
    %206 = tpu.matmul %1, %195, %cst_115 {dimension_numbers = #tpu.dot_dimension_numbers<[1], [0], [0], [1], [0, 0, 1, 1], [], []>} : vector<16x32xbf16>, vector<32x32xbf16>, vector<16x32xf32> -> vector<16x32xf32>
    %c3_116 = arith.constant 3 : index
    %c0_117 = arith.constant 0 : index
    %c0_118 = arith.constant 0 : index
    %207 = vector.load %arg5[%c3_116, %c0_117, %c0_118] : memref<4x1x32xf32, #tpu.memory_space<vmem>>, vector<1x1x32xf32>
    %208 = vector.shape_cast %207 : vector<1x1x32xf32> to vector<1x32xf32>
    %209 = vector.broadcast %208 : vector<1x32xf32> to vector<16x32xf32>
    %210 = arith.addf %206, %209 : vector<16x32xf32>
    %211 = arith.truncf %210 : vector<16x32xf32> to vector<16x32xbf16>
    %cst_119 = arith.constant dense<0.000000e+00> : vector<16x32xf32>
    %212 = tpu.matmul %1, %197, %cst_119 {dimension_numbers = #tpu.dot_dimension_numbers<[1], [0], [0], [1], [0, 0, 1, 1], [], []>} : vector<16x32xbf16>, vector<32x32xbf16>, vector<16x32xf32> -> vector<16x32xf32>
    %c3_120 = arith.constant 3 : index
    %c0_121 = arith.constant 0 : index
    %c0_122 = arith.constant 0 : index
    %213 = vector.load %arg7[%c3_120, %c0_121, %c0_122] : memref<4x1x32xf32, #tpu.memory_space<vmem>>, vector<1x1x32xf32>
    %214 = vector.shape_cast %213 : vector<1x1x32xf32> to vector<1x32xf32>
    %215 = vector.broadcast %214 : vector<1x32xf32> to vector<16x32xf32>
    %216 = arith.addf %212, %215 : vector<16x32xf32>
    %217 = arith.truncf %216 : vector<16x32xf32> to vector<16x32xbf16>
    %218 = vector.extract_strided_slice %205 {offsets = [0, 0], sizes = [8, 32], strides = [1, 1]} : vector<16x32xbf16> to vector<8x32xbf16>
    %219 = vector.extract_strided_slice %211 {offsets = [0, 0], sizes = [8, 32], strides = [1, 1]} : vector<16x32xbf16> to vector<8x32xbf16>
    %220 = vector.extract_strided_slice %217 {offsets = [0, 0], sizes = [8, 32], strides = [1, 1]} : vector<16x32xbf16> to vector<8x32xbf16>
    %cst_123 = arith.constant dense<0.000000e+00> : vector<8x8xf32>
    %221 = tpu.matmul %218, %219, %cst_123 {dimension_numbers = #tpu.dot_dimension_numbers<[1], [1], [0], [0], [0, 0, 1, 0], [], []>} : vector<8x32xbf16>, vector<8x32xbf16>, vector<8x8xf32> -> vector<8x8xf32>
    %cst_124 = arith.constant dense<0xFF800000> : vector<8xf32>
    %222 = vector.multi_reduction <maximumf>, %221, %cst_124 [1] : vector<8x8xf32> to vector<8xf32>
    %223 = vector.shape_cast %222 : vector<8xf32> to vector<8x1xf32>
    %224 = vector.broadcast %223 : vector<8x1xf32> to vector<8x8xf32>
    %225 = arith.subf %221, %224 : vector<8x8xf32>
    %226 = math.exp %225 : vector<8x8xf32>
    %cst_125 = arith.constant dense<0.000000e+00> : vector<8xf32>
    %227 = vector.multi_reduction <add>, %226, %cst_125 [1] : vector<8x8xf32> to vector<8xf32>
    %228 = vector.shape_cast %227 : vector<8xf32> to vector<8x1xf32>
    %229 = arith.truncf %226 : vector<8x8xf32> to vector<8x8xbf16>
    %cst_126 = arith.constant dense<0.000000e+00> : vector<8x32xf32>
    %230 = tpu.matmul %229, %220, %cst_126 {dimension_numbers = #tpu.dot_dimension_numbers<[1], [0], [0], [1], [0, 0, 1, 1], [], []>} : vector<8x8xbf16>, vector<8x32xbf16>, vector<8x32xf32> -> vector<8x32xf32>
    %231 = tpu.reciprocal %228 {approx = true} : vector<8x1xf32> -> vector<8x1xf32>
    %232 = vector.broadcast %231 : vector<8x1xf32> to vector<8x32xf32>
    %233 = arith.mulf %230, %232 : vector<8x32xf32>
    %234 = arith.truncf %233 : vector<8x32xf32> to vector<8x32xbf16>
    %cst_127 = arith.constant dense<0.000000e+00> : vector<8x32xf32>
    %235 = tpu.matmul %234, %199, %cst_127 {dimension_numbers = #tpu.dot_dimension_numbers<[1], [0], [0], [1], [0, 0, 1, 1], [], []>} : vector<8x32xbf16>, vector<32x32xbf16>, vector<8x32xf32> -> vector<8x32xf32>
    %236 = arith.addf %172, %235 : vector<8x32xf32>
    %237 = vector.extract_strided_slice %205 {offsets = [8, 0], sizes = [8, 32], strides = [1, 1]} : vector<16x32xbf16> to vector<8x32xbf16>
    %238 = vector.extract_strided_slice %211 {offsets = [8, 0], sizes = [8, 32], strides = [1, 1]} : vector<16x32xbf16> to vector<8x32xbf16>
    %239 = vector.extract_strided_slice %217 {offsets = [8, 0], sizes = [8, 32], strides = [1, 1]} : vector<16x32xbf16> to vector<8x32xbf16>
    %cst_128 = arith.constant dense<0.000000e+00> : vector<8x8xf32>
    %240 = tpu.matmul %237, %238, %cst_128 {dimension_numbers = #tpu.dot_dimension_numbers<[1], [1], [0], [0], [0, 0, 1, 0], [], []>} : vector<8x32xbf16>, vector<8x32xbf16>, vector<8x8xf32> -> vector<8x8xf32>
    %cst_129 = arith.constant dense<0xFF800000> : vector<8xf32>
    %241 = vector.multi_reduction <maximumf>, %240, %cst_129 [1] : vector<8x8xf32> to vector<8xf32>
    %242 = vector.shape_cast %241 : vector<8xf32> to vector<8x1xf32>
    %243 = vector.broadcast %242 : vector<8x1xf32> to vector<8x8xf32>
    %244 = arith.subf %240, %243 : vector<8x8xf32>
    %245 = math.exp %244 : vector<8x8xf32>
    %cst_130 = arith.constant dense<0.000000e+00> : vector<8xf32>
    %246 = vector.multi_reduction <add>, %245, %cst_130 [1] : vector<8x8xf32> to vector<8xf32>
    %247 = vector.shape_cast %246 : vector<8xf32> to vector<8x1xf32>
    %248 = arith.truncf %245 : vector<8x8xf32> to vector<8x8xbf16>
    %cst_131 = arith.constant dense<0.000000e+00> : vector<8x32xf32>
    %249 = tpu.matmul %248, %239, %cst_131 {dimension_numbers = #tpu.dot_dimension_numbers<[1], [0], [0], [1], [0, 0, 1, 1], [], []>} : vector<8x8xbf16>, vector<8x32xbf16>, vector<8x32xf32> -> vector<8x32xf32>
    %250 = tpu.reciprocal %247 {approx = true} : vector<8x1xf32> -> vector<8x1xf32>
    %251 = vector.broadcast %250 : vector<8x1xf32> to vector<8x32xf32>
    %252 = arith.mulf %249, %251 : vector<8x32xf32>
    %253 = arith.truncf %252 : vector<8x32xf32> to vector<8x32xbf16>
    %cst_132 = arith.constant dense<0.000000e+00> : vector<8x32xf32>
    %254 = tpu.matmul %253, %199, %cst_132 {dimension_numbers = #tpu.dot_dimension_numbers<[1], [0], [0], [1], [0, 0, 1, 1], [], []>} : vector<8x32xbf16>, vector<32x32xbf16>, vector<8x32xf32> -> vector<8x32xf32>
    %255 = arith.addf %191, %254 : vector<8x32xf32>
    %c0_133 = arith.constant 0 : index
    %c0_134 = arith.constant 0 : index
    %256 = vector.load %arg9[%c0_133, %c0_134] : memref<1x32xf32, #tpu.memory_space<vmem>>, vector<1x32xf32>
    %257 = vector.broadcast %256 : vector<1x32xf32> to vector<8x32xf32>
    %258 = arith.addf %236, %257 : vector<8x32xf32>
    %c0_135 = arith.constant 0 : index
    %c0_136 = arith.constant 0 : index
    %259 = vector.load %arg10[%c0_135, %c0_136] : memref<16x32xf32, #tpu.memory_space<vmem>>, vector<8x32xf32>
    tpu.vector_store %arg10[%c0_135, %c0_136], %258 {strides = array<i32>} : memref<16x32xf32, #tpu.memory_space<vmem>>, vector<8x32xf32>,
    %260 = vector.broadcast %256 : vector<1x32xf32> to vector<8x32xf32>
    %261 = arith.addf %255, %260 : vector<8x32xf32>
    %c8 = arith.constant 8 : index
    %c0_137 = arith.constant 0 : index
    %262 = vector.load %arg10[%c8, %c0_137] : memref<16x32xf32, #tpu.memory_space<vmem>>, vector<8x32xf32>
    tpu.vector_store %arg10[%c8, %c0_137], %261 {strides = array<i32>} : memref<16x32xf32, #tpu.memory_space<vmem>>, vector<8x32xf32>,
    return
  }
  func.func @transform_0(%arg0: i32) -> (i32, i32) {
    %c0_i32 = arith.constant 0 : i32
    %c0_i32_0 = arith.constant 0 : i32
    return %arg0, %c0_i32 : i32, i32
  }
  func.func @transform_1(%arg0: i32) -> (i32, i32, i32) {
    %c0_i32 = arith.constant 0 : i32
    %c0_i32_0 = arith.constant 0 : i32
    %c0_i32_1 = arith.constant 0 : i32
    %c0_i32_2 = arith.constant 0 : i32
    return %c0_i32, %c0_i32_0, %c0_i32_1 : i32, i32, i32
  }
  func.func @transform_2(%arg0: i32) -> (i32, i32, i32) {
    %c0_i32 = arith.constant 0 : i32
    %c0_i32_0 = arith.constant 0 : i32
    %c0_i32_1 = arith.constant 0 : i32
    %c0_i32_2 = arith.constant 0 : i32
    return %c0_i32, %c0_i32_0, %c0_i32_1 : i32, i32, i32
  }
  func.func @transform_3(%arg0: i32) -> (i32, i32, i32) {
    %c0_i32 = arith.constant 0 : i32
    %c0_i32_0 = arith.constant 0 : i32
    %c0_i32_1 = arith.constant 0 : i32
    %c0_i32_2 = arith.constant 0 : i32
    return %c0_i32, %c0_i32_0, %c0_i32_1 : i32, i32, i32
  }
  func.func @transform_4(%arg0: i32) -> (i32, i32, i32) {
    %c0_i32 = arith.constant 0 : i32
    %c0_i32_0 = arith.constant 0 : i32
    %c0_i32_1 = arith.constant 0 : i32
    %c0_i32_2 = arith.constant 0 : i32
    return %c0_i32, %c0_i32_0, %c0_i32_1 : i32, i32, i32
  }
  func.func @transform_5(%arg0: i32) -> (i32, i32, i32) {
    %c0_i32 = arith.constant 0 : i32
    %c0_i32_0 = arith.constant 0 : i32
    %c0_i32_1 = arith.constant 0 : i32
    %c0_i32_2 = arith.constant 0 : i32
    return %c0_i32, %c0_i32_0, %c0_i32_1 : i32, i32, i32
  }
  func.func @transform_6(%arg0: i32) -> (i32, i32, i32) {
    %c0_i32 = arith.constant 0 : i32
    %c0_i32_0 = arith.constant 0 : i32
    %c0_i32_1 = arith.constant 0 : i32
    %c0_i32_2 = arith.constant 0 : i32
    return %c0_i32, %c0_i32_0, %c0_i32_1 : i32, i32, i32
  }
  func.func @transform_7(%arg0: i32) -> (i32, i32, i32) {
    %c0_i32 = arith.constant 0 : i32
    %c0_i32_0 = arith.constant 0 : i32
    %c0_i32_1 = arith.constant 0 : i32
    %c0_i32_2 = arith.constant 0 : i32
    return %c0_i32, %c0_i32_0, %c0_i32_1 : i32, i32, i32
  }
  func.func @transform_8(%arg0: i32) -> (i32, i32) {
    %c0_i32 = arith.constant 0 : i32
    %c0_i32_0 = arith.constant 0 : i32
    %c0_i32_1 = arith.constant 0 : i32
    return %c0_i32, %c0_i32_0 : i32, i32
  }
  func.func @transform_9(%arg0: i32) -> (i32, i32) {
    %c0_i32 = arith.constant 0 : i32
    %c0_i32_0 = arith.constant 0 : i32
    return %arg0, %c0_i32 : i32, i32
  }
}

</mosaic_0001>

<bundles_post_ra>
// kernel: tpu_custom_call.1
= control target key start
LH: loop header
LB: loop body
LE: loop exit
PB: predicated region body
PF: predicated region fallthrough
CT: control target
= control target key end

     0   :  { %14 = vsyncpa [#allocation3], 0  ;;  %s3306_s0 = inlined_call_operand.hbm [shape: f32[16,32], index: 0, kind: input, shape index: {}]   ;;  %s3307_s1 = inlined_call_operand.hbm [shape: bf16[4,32,32], index: 1, kind: input, shape index: {}]   ;;  %s3308_s2 = inlined_call_operand.vmem [shape: f32[4,1,32], index: 2, kind: input, shape index: {}]   ;;  %s3309_s3 = inlined_call_operand.hbm [shape: bf16[4,32,32], index: 3, kind: input, shape index: {}]   ;;  %s3310_s4 = inlined_call_operand.vmem [shape: f32[4,1,32], index: 4, kind: input, shape index: {}]   ;;  %s3311_s5 = inlined_call_operand.hbm [shape: bf16[4,32,32], index: 5, kind: input, shape index: {}]   ;;  %s3312_s6 = inlined_call_operand.vmem [shape: f32[4,1,32], index: 6, kind: input, shape index: {}]   ;;  %s3313_s7 = inlined_call_operand.hbm [shape: bf16[4,32,32], index: 7, kind: input, shape index: {}]   ;;  %s3314_s8 = inlined_call_operand.vmem [shape: f32[1,32], index: 8, kind: input, shape index: {}]   ;;  %s3315_s9 = inlined_call_operand.hbm [shape: f32[16,32], index: 9, kind: output, shape index: {}]  }
   0x1   :  { %15 = vsyncpa [#allocation6], 0 }
   0x2   :  { %16 = vsyncpa [#allocation9], 0 }
   0x3   :  { %17 = vsyncpa [#allocation4], 0  ;;  %s2872_s30 = smov [#allocation5]   ;;  %s2732_s13 = scalar_lea.hbm %s3307_s1, 1024 }
   0x4   :  { %s35_s10 = sshll.u32 %s2872_s30, 4  ;;  %p2733_p0 = scmp.ne.s32.totalorder %s3307_s1, %s2732_s13  ;;  %s36_s10 = int_to_ptr.vmem [resolvable:$true] %s35_s10 }
   0x5   :  { %p2736_p1 = scmp.lt.u32.totalorder %s2732_s13, %s3307_s1 }
   0x7   :  { %p2738_p2 = pnand %p2736_p1, %p2733_p0 }
   0x9   :  { %2741 = shalt.err (!%p2738_p2)
}
   0xa   :  { %s2742_s18 = scalar_lea.vmem %s36_s10, 1024  ;;  %p2747_p4 = scmp.lt.s32.totalorder %s36_s10, %s36_s10 }
   0xb   :  { %p2743_p3 = scmp.ne.s32.totalorder %s36_s10, %s2742_s18  ;;  %p2748_p5 = scmp.lt.s32.totalorder %s2742_s18, %s2742_s18 }
   0xd   :  { %p2749_p6 = por %p2748_p5, %p2747_p4 }
   0xf   :  { %p2750_p7 = pnand %p2749_p6, %p2743_p3 }
  0x11   :  { %2753 = shalt.err (!%p2750_p7)
}
  0x12   :  { %s2873_s19 = smov 64   ;;  %s2874_s20 = smov 4  }
  0x13   :  { %41 = dma.hbm_to_vmem [thread:$0]  %s3307_s1, 1024, %s36_s10, [#allocation6], %s2873_s19, %s2873_s19, %s2874_s20  }
  0x14   :  { %s2875_s23 = smov [#allocation8]   ;;  %s2876_s25 = smov [#allocation2]  }
  0x15   :  { %s63_s24 = sshll.u32 %s2875_s23, 4  ;;  %s23_s26 = sshll.u32 %s2876_s25, 4  ;;  %s64_s24 = int_to_ptr.vmem [resolvable:$true] %s63_s24  ;;  %s24_s26 = int_to_ptr.vmem [resolvable:$true] %s23_s26 }
  0x16   :  { %s2754_s29 = scalar_lea.hbm %s3311_s5, 1024 }
  0x17   :  { %p2755_p8 = scmp.ne.s32.totalorder %s3311_s5, %s2754_s29  ;;  %p2758_p9 = scmp.lt.u32.totalorder %s2754_s29, %s3311_s5 }
  0x19   :  { %p2760_p10 = pnand %p2758_p9, %p2755_p8 }
  0x1b   :  { %2763 = shalt.err (!%p2760_p10)
}
  0x1c   :  { %s2764_s1 = scalar_lea.vmem %s64_s24, 1024  ;;  %p2769_p12 = scmp.lt.s32.totalorder %s64_s24, %s64_s24 }
  0x1d   :  { %p2765_p11 = scmp.ne.s32.totalorder %s64_s24, %s2764_s1  ;;  %p2770_p13 = scmp.lt.s32.totalorder %s2764_s1, %s2764_s1 }
  0x1f   :  { %p2771_p0 = por %p2770_p13, %p2769_p12 }
  0x21   :  { %p2772_p1 = pnand %p2771_p0, %p2765_p11 }
  0x23   :  { %2775 = shalt.err (!%p2772_p1)
}
  0x24   :  { %69 = dma.hbm_to_vmem [thread:$0]  %s3311_s5, 1024, %s64_s24, [#allocation9], %s2873_s19, %s2873_s19, %s2874_s20  }
  0x25   :  { %s2776_s17 = scalar_lea.hbm %s3306_s0, 256 }
  0x26   :  { %p2777_p2 = scmp.ne.s32.totalorder %s3306_s0, %s2776_s17  ;;  %p2780_p3 = scmp.lt.u32.totalorder %s2776_s17, %s3306_s0 }
  0x28   :  { %p2782_p4 = pnand %p2780_p3, %p2777_p2 }
  0x2a   :  { %2785 = shalt.err (!%p2782_p4)
}
  0x2b   :  { %s2786_s25 = scalar_lea.vmem %s24_s26, 256  ;;  %p2791_p6 = scmp.lt.s32.totalorder %s24_s26, %s24_s26 }
  0x2c   :  { %p2787_p5 = scmp.ne.s32.totalorder %s24_s26, %s2786_s25  ;;  %p2792_p7 = scmp.lt.s32.totalorder %s2786_s25, %s2786_s25 }
  0x2e   :  { %p2793_p8 = por %p2792_p7, %p2791_p6 }
  0x30   :  { %p2794_p9 = pnand %p2793_p8, %p2787_p5 }
  0x32   :  { %2797 = shalt.err (!%p2794_p9)
}
  0x33   :  { %s2877_s5 = smov 128   ;;  %s2878_s24 = smov 8  }
  0x34   :  { %29 = dma.hbm_to_vmem [thread:$0]  %s3306_s0, 256, %s24_s26, [#allocation3], %s2877_s5, %s2877_s5, %s2878_s24  }
  0x35   :  { %s2879_s29 = smov [#allocation7]   ;;  %s2880_s11 = smov [#allocation10]  }
  0x36   :  { %s49_s30 = sshll.u32 %s2879_s29, 4  ;;  %s77_s12 = sshll.u32 %s2880_s11, 4  ;;  %s50_s30 = int_to_ptr.vmem [resolvable:$true] %s49_s30  ;;  %s78_s12 = int_to_ptr.vmem [resolvable:$true] %s77_s12 }
  0x37   :  { %s2798_s10 = scalar_lea.hbm %s3309_s3, 1024 }
  0x38   :  { %p2799_p10 = scmp.ne.s32.totalorder %s3309_s3, %s2798_s10  ;;  %p2802_p11 = scmp.lt.u32.totalorder %s2798_s10, %s3309_s3 }
  0x3a   :  { %p2804_p12 = pnand %p2802_p11, %p2799_p10 }
  0x3c   :  { %2807 = shalt.err (!%p2804_p12)
}
  0x3d   :  { %s2808_s0 = scalar_lea.vmem %s50_s30, 1024  ;;  %p2813_p0 = scmp.lt.s32.totalorder %s50_s30, %s50_s30 }
  0x3e   :  { %p2809_p13 = scmp.ne.s32.totalorder %s50_s30, %s2808_s0  ;;  %p2814_p1 = scmp.lt.s32.totalorder %s2808_s0, %s2808_s0 }
  0x40   :  { %p2815_p2 = por %p2814_p1, %p2813_p0 }
  0x42   :  { %p2816_p3 = pnand %p2815_p2, %p2809_p13 }
  0x44   :  { %2819 = shalt.err (!%p2816_p3)
}
  0x45   :  { %55 = dma.hbm_to_vmem [thread:$0]  %s3309_s3, 1024, %s50_s30, [#allocation6], %s2873_s19, %s2873_s19, %s2874_s20  }
  0x46   :  { %s2820_s23 = scalar_lea.hbm %s3313_s7, 1024 }
  0x47   :  { %p2821_p4 = scmp.ne.s32.totalorder %s3313_s7, %s2820_s23  ;;  %p2824_p5 = scmp.lt.u32.totalorder %s2820_s23, %s3313_s7 }
  0x49   :  { %p2826_p6 = pnand %p2824_p5, %p2821_p4 }
  0x4b   :  { %2829 = shalt.err (!%p2826_p6)
}
  0x4c   :  { %s2830_s11 = scalar_lea.vmem %s78_s12, 1024  ;;  %p2835_p8 = scmp.lt.s32.totalorder %s78_s12, %s78_s12 }
  0x4d   :  { %p2831_p7 = scmp.ne.s32.totalorder %s78_s12, %s2830_s11  ;;  %p2836_p9 = scmp.lt.s32.totalorder %s2830_s11, %s2830_s11 }
  0x4f   :  { %p2837_p10 = por %p2836_p9, %p2835_p8 }
  0x51   :  { %p2838_p11 = pnand %p2837_p10, %p2831_p7 }
  0x53   :  { %2841 = shalt.err (!%p2838_p11)
}
  0x54   :  { %83 = dma.hbm_to_vmem [thread:$0]  %s3313_s7, 1024, %s78_s12, [#allocation9], %s2873_s19, %s2873_s19, %s2874_s20  }
  0x55   :  { %2864 = dma.done.wait [#allocation3], 256  }
  0x56   :  { %2865 = vsyncadd [#allocation3], 4294967040 }
  0x57   :  { %2866 = dma.done.wait [#allocation6], 2048  }
  0x58   :  { %2867 = vsyncadd [#allocation6], 4294965248 }
  0x59   :  { %2868 = dma.done.wait [#allocation9], 2048  }
  0x5a   :  { %2869 = vsyncadd [#allocation9], 4294965248  ;;  %v2881_v0 = vmov 0.0   ;;  %vm2882_vm0 = vmmov 0   ;;  %v2668_v1 = vld [vmem:[#allocation7] sm:$0xff]   ;;  %v2669_v2 = vld [vmem:[#allocation7 + $0x8] sm:$0xff]  }
  0x5b   :  { %2408 = vmatprep.subr.bf16.mxu1 %v2881_v0  ;;  %2400 = vmatprep.subr.bf16.mxu0 %v2881_v0  ;;  %v2670_v3 = vld [vmem:[#allocation5] sm:$0xff]   ;;  %v102_v4 = vld [vmem:[#allocation2] sm:$0xff]  ;;  %v103_v5 = vld [vmem:[#allocation2 + $0x8] sm:$0xff]  ;;  %vm140_vm1 = vcmask 261120   ;;  %vm354_vm2 = vcmask 64512   ;;  %vm368_vm3 = vcmask 1043456  }
  0x5c   :  { %2412 = vmatprep.mubr.msk.bf16.mxu1 %vm2882_vm0, %v2881_v0  ;;  %2404 = vmatprep.mubr.msk.bf16.mxu0 %vm2882_vm0, %v2881_v0  ;;  %v2671_v6 = vld [vmem:[#allocation5 + $0x8] sm:$0xff]   ;;  %v3016_v7 = vpack.c.bf16 %v103_v5, %v102_v4  ;;  %v2672_v8 = vld [vmem:[#allocation8] sm:$0xff]   ;;  %v2222_v10 = vld [vmem:[%s3310_s4] ss:$0 sm:$0xff] }
  0x5d   :  { %2409 = vmatpush3.bf16.msra.mxu1 %v2668_v1  ;;  %2401 = vmatpush3.bf16.msra.mxu0 %v2670_v3  ;;  %v2673_v9 = vld [vmem:[#allocation8 + $0x8] sm:$0xff]   ;;  %v2218_v12 = vld [vmem:[%s3308_s2] ss:$0 sm:$0xff]  ;;  %v2677_v50 = vld [vmem:[#allocation5 + $0x18] sm:$0xff]  }
  0x5e   :  { %2410 = vmatprep.subr.bf16.mxu1 %v2881_v0  ;;  %2402 = vmatprep.subr.bf16.mxu0 %v2881_v0  ;;  %v2226_v41 = vld [vmem:[%s3312_s6] ss:$0 sm:$0xff]  ;;  %v2675_v3 = vld [vmem:[#allocation7 + $0x18] sm:$0xff]   ;;  %v2235_v5 = vld [vmem:[%s3308_s2 + $0x1] ss:$0 sm:$0xff] }
  0x5f   :  { %v2676_v49 = vld [vmem:[#allocation5 + $0x10] sm:$0xff]  }
  0x60   :  { %v2674_v63 = vld [vmem:[#allocation7 + $0x10] sm:$0xff]  }
  0x61   :  { %2411 = vmatpush3.bf16.msra.mxu1 %v2669_v2  ;;  %2403 = vmatpush3.bf16.msra.mxu0 %v2671_v6 }
  0x62   :  { %2424 = vmatprep.subr.bf16.mxu1 %v2881_v0  ;;  %2416 = vmatprep.subr.bf16.mxu0 %v2881_v0 }
  0x64   :  { %2413 = vmatmul.mubr.msk.bf16.vlgmr.msra.gmra.mrb[0].mxu1 %vm140_vm1, %v3016_v7  ;;  %2405 = vmatmul.mubr.msk.bf16.vlgmr.msra.gmra.mrb[0].mxu0 %vm140_vm1, %v3016_v7 }
  0x65   :  { %2426 = vmatprep.mubr.msk.bf16.mxu1 %vm2882_vm0, %v2881_v0  ;;  %2420 = vmatprep.mubr.msk.bf16.mxu0 %vm2882_vm0, %v2881_v0 }
  0x66   :  { %2417 = vmatpush3.bf16.msra.mxu0 %v2672_v8 }
  0x67   :  { %2418 = vmatprep.subr.bf16.mxu0 %v2881_v0 }
  0x6a   :  { %2419 = vmatpush3.bf16.msra.mxu0 %v2673_v9 }
  0x6b   :  { %2430 = vmatprep.subr.bf16.mxu0 %v2881_v0 }
  0x6d   :  { %2421 = vmatmul.mubr.msk.bf16.vlgmr.msra.gmra.mrb[4].mxu0 %vm140_vm1, %v3016_v7 }
  0x6e   :  { %2432 = vmatprep.mubr.msk.bf16.mxu0 %vm2882_vm0, %v2881_v0 }
 0x137   :  { %v239_v11 = vpop.f32.mrb[0].mxu1  ;;  %v178_v15 = vpop.f32.mrb[0].mxu0 }
 0x138   :  { %v2414_v13 = vpop.f32.mrb[1].mxu1  ;;  %v240_v16 = vadd.f32 %v2222_v10, %v239_v11  ;;  %v179_v19 = vadd.f32 %v2218_v12, %v178_v15  ;;  %v2406_v20 = vpop.f32.mrb[1].mxu0 }
 0x139   :  { %v242_v14 = vpop.f32.mrb[2].mxu1  ;;  %v181_v21 = vpop.f32.mrb[2].mxu0  ;;  %v2678_v13 = vld [vmem:[#allocation8 + $0x10] sm:$0xff]  }
 0x13a   :  { %v243_v17 = vadd.f32 %v2222_v10, %v242_v14  ;;  %v2415_v18 = vpop.f32.mrb[3].mxu1  ;;  %v182_v23 = vadd.f32 %v2218_v12, %v181_v21  ;;  %v2407_v24 = vpop.f32.mrb[3].mxu0  ;;  %v2679_v14 = vld [vmem:[#allocation8 + $0x18] sm:$0xff]  }
 0x13c   :  { %v246_v22 = vpack.c.bf16 %v243_v17, %v240_v16  ;;  %v185_v25 = vpack.c.bf16 %v182_v23, %v179_v19  ;;  %v2240_v23 = vld [vmem:[%s3310_s4 + $0x1] ss:$0 sm:$0xff] }
 0x13e   :  { %v312_v26 = vsel %vm140_vm1, %v246_v22, 0  ;;  %v418_v27 = vrot.slane %v246_v22, 4  ;;  %v416_v29 = vrot.slane %v185_v25, 4 }
 0x13f   :  { %2425 = vmatpush3.bf16.xpose.msra.mxu1 %v312_v26 }
 0x140   :  { %2436 = vmatprep.subr.bf16.mxu1 %v2881_v0  ;;  %v423_v28 = vsel %vm140_vm1, %v418_v27, 0  ;;  %v300_v40 = vpop.f32.mrb[4].mxu0 }
 0x141   :  { %v2422_v42 = vpop.f32.mrb[5].mxu0  ;;  %v301_v43 = vadd.f32 %v2226_v41, %v300_v40 }
 0x142   :  { %v303_v44 = vpop.f32.mrb[6].mxu0 }
 0x143   :  { %v304_v45 = vadd.f32 %v2226_v41, %v303_v44  ;;  %v2423_v46 = vpop.f32.mrb[7].mxu0 }
 0x145   :  { %v307_v47 = vpack.c.bf16 %v304_v45, %v301_v43 }
 0x146   :  { %2427 = vmatmul.mubr.msk.bf16.vlgmr.msra.gmra.mrb[4].mxu1 %vm140_vm1, %v185_v25 }
 0x147   :  { %2437 = vmatpush3.bf16.xpose.msra.mxu1 %v423_v28  ;;  %2438 = vmatprep.mubr.msk.bf16.mxu1 %vm2882_vm0, %v2881_v0  ;;  %v370_v48 = vsel %vm368_vm3, %v307_v47, 0  ;;  %v476_v57 = vrot.slane %v307_v47, 4 }
 0x148   :  { %2448 = vmatprep.subr.bf16.mxu1 %v2881_v0  ;;  %2431 = vmatpush3.bf16.msra.mxu0 %v370_v48 }
 0x149   :  { %2442 = vmatprep.subr.bf16.mxu0 %v2881_v0  ;;  %v481_v61 = vsel %vm368_vm3, %v476_v57, 0 }
 0x14e   :  { %2439 = vmatmul.mubr.msk.bf16.vlgmr.msra.gmra.mrb[8].mxu1 %vm140_vm1, %v416_v29 }
 0x14f   :  { %2452 = vmatprep.mubr.msk.bf16.mxu1 %vm2882_vm0, %v2881_v0  ;;  %2449 = vmatpush3.bf16.msra.mxu1 %v2676_v49 }
 0x150   :  { %2450 = vmatprep.subr.bf16.mxu1 %v2881_v0 }
 0x153   :  { %2451 = vmatpush3.bf16.msra.mxu1 %v2677_v50 }
 0x154   :  { %2464 = vmatprep.subr.bf16.mxu1 %v2881_v0 }
 0x156   :  { %2453 = vmatmul.mubr.msk.bf16.vlgmr.msra.gmra.mrb[12].mxu1 %vm140_vm1, %v3016_v7 }
 0x157   :  { %2468 = vmatprep.mubr.msk.bf16.mxu1 %vm2882_vm0, %v2881_v0  ;;  %2465 = vmatpush3.bf16.msra.mxu1 %v2678_v13 }
 0x158   :  { %2466 = vmatprep.subr.bf16.mxu1 %v2881_v0 }
 0x15b   :  { %2467 = vmatpush3.bf16.msra.mxu1 %v2679_v14 }
 0x15c   :  { %2478 = vmatprep.subr.bf16.mxu1 %v2881_v0 }
 0x15e   :  { %2469 = vmatmul.mubr.msk.bf16.vlgmr.msra.gmra.mrb[16].mxu1 %vm140_vm1, %v3016_v7 }
 0x15f   :  { %2480 = vmatprep.mubr.msk.bf16.mxu1 %vm2882_vm0, %v2881_v0 }
 0x219   :  { %v348_v30 = vpop.f32.mrb[4].mxu1 }
 0x21a   :  { %v2428_v31 = vpop.f32.mrb[5].mxu1  ;;  %v355_v32 = vsel %vm354_vm2, %v348_v30, -inf }
 0x21b   :  { %356 = vmax.xlane.f32.xlu0 %v355_v32  ;;  %v351_v33 = vpop.f32.mrb[6].mxu1 }
 0x21c   :  { %v2429_v34 = vpop.f32.mrb[7].mxu1 }
 0x221   :  { %v459_v35 = vpop.f32.mrb[8].mxu1 }
 0x222   :  { %v2440_v36 = vpop.f32.mrb[9].mxu1  ;;  %v465_v37 = vsel %vm354_vm2, %v459_v35, -inf }
 0x223   :  { %466 = vmax.xlane.f32.xlu0 %v465_v37  ;;  %v462_v38 = vpop.f32.mrb[10].mxu1 }
 0x224   :  { %v2441_v39 = vpop.f32.mrb[11].mxu1 }
 0x225   :  { %v2245_v39 = vld [vmem:[%s3312_s6 + $0x1] ss:$0 sm:$0xff] }
 0x229   :  { %v600_v4 = vpop.f32.mrb[12].mxu1 }
 0x22a   :  { %v2454_v6 = vpop.f32.mrb[13].mxu1  ;;  %v601_v8 = vadd.f32 %v2235_v5, %v600_v4 }
 0x22b   :  { %v603_v9 = vpop.f32.mrb[14].mxu1 }
 0x22c   :  { %v604_v10 = vadd.f32 %v2235_v5, %v603_v9  ;;  %v2455_v11 = vpop.f32.mrb[15].mxu1 }
 0x22e   :  { %v3083_v12 = vpack.c.bf16 %v604_v10, %v601_v8 }
 0x230   :  { %v948_v14 = vrot.slane %v3083_v12, 4 }
 0x231   :  { %v724_v32 = vpop.f32.mrb[16].mxu1 }
 0x232   :  { %v2470_v33 = vpop.f32.mrb[17].mxu1  ;;  %v725_v40 = vadd.f32 %v2245_v39, %v724_v32 }
 0x233   :  { %v727_v41 = vpop.f32.mrb[18].mxu1 }
 0x234   :  { %v728_v42 = vadd.f32 %v2245_v39, %v727_v41  ;;  %v2471_v43 = vpop.f32.mrb[19].mxu1 }
 0x235   :  { %v2686_v43 = vld [vmem:[#allocation5 + $0x20] sm:$0xff]  }
 0x236   :  { %v731_v44 = vpack.c.bf16 %v728_v42, %v725_v40 }
 0x238   :  { %v792_v45 = vsel %vm368_vm3, %v731_v44, 0  ;;  %v1008_v57 = vrot.slane %v731_v44, 4 }
 0x239   :  { %2479 = vmatpush3.bf16.msra.mxu1 %v792_v45 }
 0x23a   :  { %2492 = vmatprep.subr.bf16.mxu1 %v2881_v0 }
 0x2a8   :  { %v357_v51 = vpop.xlane.xlu0 %356 }
 0x2a9   :  { %v358_v52 = vsub.f32 %v348_v30, %v357_v51  ;;  %v3111_v51 = vld [vmem:[#allocation10] sm:$0xff]  }
 0x2ab   :  { %v359_v53 = vmul.f32 1.442695, %v358_v52 }
 0x2ad   :  { %2700 = vpow2.f32 %v359_v53 }
 0x2b0   :  { %v467_v54 = vpop.xlane.xlu0 %466 }
 0x2b1   :  { %v468_v55 = vsub.f32 %v459_v35, %v467_v54 }
 0x2b3   :  { %v469_v56 = vmul.f32 1.442695, %v468_v55  ;;  %v3116_v55 = vld [vmem:[#allocation10 + $0x8] sm:$0xff]  }
 0x2b5   :  { %2702 = vpow2.f32 %v469_v56 }
 0x2b7   :  { %v2701_v58 = vpop.eup %2700 }
 0x2b8   :  { %v361_v59 = vsel %vm354_vm2, %v2701_v58, 0.0  ;;  %v364_v60 = vpack.c.bf16 %v2701_v58, %v2701_v58 }
 0x2b9   :  { %362 = vadd.xlane.f32.xlu0 %v361_v59  ;;  %v1013_v59 = vsel %vm368_vm3, %v1008_v57, 0 }
 0x2ba   :  { %2433 = vmatmul.mubr.msk.bf16.vlgmr.msra.gmra.mrb[8].mxu0 %vm354_vm2, %v364_v60  ;;  %v2682_v60 = vld [vmem:[#allocation10 + $0x10] sm:$0xff]  }
 0x2bb   :  { %2443 = vmatpush3.bf16.msra.mxu0 %v481_v61  ;;  %2444 = vmatprep.mubr.msk.bf16.mxu0 %vm2882_vm0, %v2881_v0  ;;  %v2683_v61 = vld [vmem:[#allocation10 + $0x18] sm:$0xff]  }
 0x2bc   :  { %2456 = vmatprep.subr.bf16.mxu0 %v2881_v0 }
 0x2bf   :  { %v2703_v62 = vpop.eup %2702 }
 0x2c0   :  { %v471_v1 = vsel %vm354_vm2, %v2703_v62, 0.0  ;;  %v474_v2 = vpack.c.bf16 %v2703_v62, %v2703_v62 }
 0x2c1   :  { %472 = vadd.xlane.f32.xlu0 %v471_v1 }
 0x2c2   :  { %2445 = vmatmul.mubr.msk.bf16.vlgmr.msra.gmra.mrb[12].mxu0 %vm354_vm2, %v474_v2 }
 0x2c3   :  { %2457 = vmatpush3.bf16.msra.mxu0 %v2674_v63  ;;  %2460 = vmatprep.mubr.msk.bf16.mxu0 %vm2882_vm0, %v2881_v0 }
 0x2c4   :  { %2458 = vmatprep.subr.bf16.mxu0 %v2881_v0 }
 0x2c7   :  { %2459 = vmatpush3.bf16.msra.mxu0 %v2675_v3 }
 0x2c8   :  { %2472 = vmatprep.subr.bf16.mxu0 %v2881_v0 }
 0x2ca   :  { %2461 = vmatmul.mubr.msk.bf16.vlgmr.msra.gmra.mrb[16].mxu0 %vm140_vm1, %v3016_v7 }
 0x2cb   :  { %2474 = vmatprep.mubr.msk.bf16.mxu0 %vm2882_vm0, %v2881_v0 }
 0x346   :  { %v363_v49 = vpop.xlane.xlu0 %362 }
 0x38d   :  { %v406_v15 = vpop.f32.mrb[8].mxu0 }
 0x38e   :  { %v2434_v16 = vpop.f32.mrb[9].mxu0 }
 0x38f   :  { %v409_v17 = vpop.f32.mrb[10].mxu0 }
 0x390   :  { %v2435_v18 = vpop.f32.mrb[11].mxu0 }
 0x395   :  { %v3091_v19 = vpop.f32.mrb[12].mxu0 }
 0x396   :  { %v2446_v20 = vpop.f32.mrb[13].mxu0 }
 0x397   :  { %v520_v21 = vpop.f32.mrb[14].mxu0 }
 0x398   :  { %v2447_v22 = vpop.f32.mrb[15].mxu0 }
 0x39d   :  { %v662_v24 = vpop.f32.mrb[16].mxu0 }
 0x39e   :  { %v2462_v25 = vpop.f32.mrb[17].mxu0  ;;  %v663_v27 = vadd.f32 %v2240_v23, %v662_v24 }
 0x39f   :  { %v665_v26 = vpop.f32.mrb[18].mxu0 }
 0x3a0   :  { %v666_v28 = vadd.f32 %v2240_v23, %v665_v26  ;;  %v2463_v29 = vpop.f32.mrb[19].mxu0 }
 0x3a1   :  { %v473_v29 = vpop.xlane.xlu0 %472 }
 0x3a2   :  { %v3096_v30 = vpack.c.bf16 %v666_v28, %v663_v27 }
 0x3a4   :  { %v736_v31 = vsel %vm140_vm1, %v3096_v30, 0  ;;  %v950_v2 = vrot.slane %v3096_v30, 4 }
 0x3a5   :  { %2473 = vmatpush3.bf16.xpose.msra.mxu0 %v736_v31 }
 0x3a6   :  { %2484 = vmatprep.subr.bf16.mxu0 %v2881_v0  ;;  %v955_v9 = vsel %vm140_vm1, %v950_v2, 0 }
 0x3ac   :  { %2475 = vmatmul.mubr.msk.bf16.vlgmr.msra.gmra.mrb[20].mxu0 %vm140_vm1, %v3083_v12 }
 0x3ad   :  { %2488 = vmatprep.mubr.msk.bf16.mxu0 %vm2882_vm0, %v2881_v0  ;;  %2485 = vmatpush3.bf16.msra.mxu0 %v2682_v60 }
 0x3ae   :  { %2486 = vmatprep.subr.bf16.mxu0 %v2881_v0 }
 0x3b1   :  { %2487 = vmatpush3.bf16.msra.mxu0 %v2683_v61 }
 0x3b2   :  { %2500 = vmatprep.subr.bf16.mxu0 %v2881_v0 }
 0x47f   :  { %v772_v34 = vpop.f32.mrb[20].mxu0 }
 0x480   :  { %v2476_v35 = vpop.f32.mrb[21].mxu0  ;;  %v778_v36 = vsel %vm354_vm2, %v772_v34, -inf }
 0x481   :  { %779 = vmax.xlane.f32.xlu1 %v778_v36  ;;  %v775_v37 = vpop.f32.mrb[22].mxu0  ;;  %v2684_v36 = vld [vmem:[#allocation7 + $0x20] sm:$0xff]  }
 0x482   :  { %v2477_v38 = vpop.f32.mrb[23].mxu0  ;;  %v2685_v37 = vld [vmem:[#allocation7 + $0x28] sm:$0xff]  }
 0x50e   :  { %v780_v46 = vpop.xlane.xlu1 %779 }
 0x50f   :  { %v781_v47 = vsub.f32 %v772_v34, %v780_v46  ;;  %v2687_v46 = vld [vmem:[#allocation5 + $0x28] sm:$0xff]  }
 0x511   :  { %v782_v48 = vmul.f32 1.442695, %v781_v47 }
 0x513   :  { %2704 = vpow2.f32 %v782_v48 }
 0x514   :  { %2706 = vrcp.f32 %v363_v49 }
 0x51d   :  { %v2705_v50 = vpop.eup %2704 }
 0x51e   :  { %v784_v52 = vsel %vm354_vm2, %v2705_v50, 0.0  ;;  %v787_v53 = vpack.c.bf16 %v2705_v50, %v2705_v50  ;;  %v2707_v54 = vpop.eup %2706 }
 0x51f   :  { %785 = vadd.xlane.f32.xlu1 %v784_v52  ;;  %v413_v56 = vmul.f32 %v2707_v54, %v406_v15 }
 0x520   :  { %2481 = vmatmul.mubr.msk.bf16.vlgmr.msra.gmra.mrb[20].mxu1 %vm354_vm2, %v787_v53 }
 0x521   :  { %2493 = vmatpush3.bf16.msra.mxu1 %v3111_v51  ;;  %2496 = vmatprep.mubr.msk.bf16.mxu1 %vm2882_vm0, %v2881_v0  ;;  %v414_v58 = vpack.c.bf16 %v413_v56, %v413_v56 }
 0x522   :  { %2494 = vmatprep.subr.bf16.mxu1 %v2881_v0 }
 0x525   :  { %2495 = vmatpush3.bf16.msra.mxu1 %v3116_v55 }
 0x526   :  { %2506 = vmatprep.subr.bf16.mxu1 %v2881_v0 }
 0x528   :  { %2497 = vmatmul.mubr.msk.bf16.vlgmr.msra.gmra.mrb[24].mxu1 %vm140_vm1, %v414_v58 }
 0x529   :  { %2507 = vmatpush3.bf16.msra.mxu1 %v1013_v59  ;;  %2508 = vmatprep.mubr.msk.bf16.mxu1 %vm2882_vm0, %v2881_v0 }
 0x52a   :  { %2520 = vmatprep.subr.bf16.mxu1 %v2881_v0 }
 0x5ac   :  { %v786_v62 = vpop.xlane.xlu1 %785 }
 0x5ad   :  { %2708 = vrcp.f32 %v786_v62 }
 0x5b7   :  { %v2709_v63 = vpop.eup %2708 }
 0x5f3   :  { %v828_v1 = vpop.f32.mrb[20].mxu1 }
 0x5f4   :  { %v835_v3 = vmul.f32 %v2709_v63, %v828_v1  ;;  %v2482_v4 = vpop.f32.mrb[21].mxu1 }
 0x5f5   :  { %v831_v5 = vpop.f32.mrb[22].mxu1  ;;  %v2262_v4 = vld [vmem:[%s3308_s2 + $0x2] ss:$0 sm:$0xff] }
 0x5f6   :  { %v836_v6 = vpack.c.bf16 %v835_v3, %v835_v3  ;;  %v2483_v8 = vpop.f32.mrb[23].mxu1 }
 0x5f8   :  { %2489 = vmatmul.mubr.msk.bf16.vlgmr.msra.gmra.mrb[24].mxu0 %vm140_vm1, %v836_v6 }
 0x5f9   :  { %2501 = vmatpush3.bf16.xpose.msra.mxu0 %v955_v9  ;;  %2502 = vmatprep.mubr.msk.bf16.mxu0 %vm2882_vm0, %v2881_v0 }
 0x5fa   :  { %2512 = vmatprep.subr.bf16.mxu0 %v2881_v0 }
 0x5fb   :  { %v941_v10 = vpop.f32.mrb[24].mxu1 }
 0x5fc   :  { %v2498_v11 = vpop.f32.mrb[25].mxu1 }
 0x5fd   :  { %v944_v13 = vpop.f32.mrb[26].mxu1 }
 0x5fe   :  { %v2499_v15 = vpop.f32.mrb[27].mxu1 }
 0x600   :  { %2503 = vmatmul.mubr.msk.bf16.vlgmr.msra.gmra.mrb[28].mxu0 %vm140_vm1, %v948_v14 }
 0x601   :  { %2513 = vmatpush3.bf16.msra.mxu0 %v2682_v60  ;;  %2516 = vmatprep.mubr.msk.bf16.mxu0 %vm2882_vm0, %v2881_v0  ;;  %v2688_v60 = vld [vmem:[#allocation8 + $0x20] sm:$0xff]  }
 0x602   :  { %2514 = vmatprep.subr.bf16.mxu0 %v2881_v0 }
 0x605   :  { %2515 = vmatpush3.bf16.msra.mxu0 %v2683_v61  ;;  %v2689_v61 = vld [vmem:[#allocation8 + $0x28] sm:$0xff]  }
 0x606   :  { %2528 = vmatprep.subr.bf16.mxu0 %v2881_v0 }
 0x6cb   :  { %v886_v16 = vpop.f32.mrb[24].mxu0 }
 0x6cc   :  { %v3142_v17 = vadd.f32 %v941_v10, %v886_v16  ;;  %v2490_v18 = vpop.f32.mrb[25].mxu0 }
 0x6cd   :  { %v889_v20 = vpop.f32.mrb[26].mxu0 }
 0x6ce   :  { %v2491_v21 = vpop.f32.mrb[27].mxu0 }
 0x6d3   :  { %v991_v22 = vpop.f32.mrb[28].mxu0 }
 0x6d4   :  { %v2504_v12 = vpop.f32.mrb[29].mxu0  ;;  %v997_v23 = vsel %vm354_vm2, %v991_v22, -inf }
 0x6d5   :  { %998 = vmax.xlane.f32.xlu1 %v997_v23  ;;  %v994_v24 = vpop.f32.mrb[30].mxu0  ;;  %v2272_v12 = vld [vmem:[%s3312_s6 + $0x2] ss:$0 sm:$0xff] }
 0x6d6   :  { %v2505_v25 = vpop.f32.mrb[31].mxu0 }
 0x762   :  { %v999_v26 = vpop.xlane.xlu1 %998 }
 0x763   :  { %v1000_v27 = vsub.f32 %v991_v22, %v999_v26 }
 0x765   :  { %v1001_v28 = vmul.f32 1.442695, %v1000_v27 }
 0x767   :  { %2710 = vpow2.f32 %v1001_v28 }
 0x768   :  { %2712 = vrcp.f32 %v473_v29 }
 0x771   :  { %v2711_v30 = vpop.eup %2710 }
 0x772   :  { %v1003_v31 = vsel %vm354_vm2, %v2711_v30, 0.0  ;;  %v1006_v32 = vpack.c.bf16 %v2711_v30, %v2711_v30  ;;  %v2713_v33 = vpop.eup %2712 }
 0x773   :  { %1004 = vadd.xlane.f32.xlu1 %v1003_v31  ;;  %v524_v34 = vmul.f32 %v2713_v33, %v3091_v19 }
 0x774   :  { %2509 = vmatmul.mubr.msk.bf16.vlgmr.msra.gmra.mrb[28].mxu1 %vm354_vm2, %v1006_v32 }
 0x775   :  { %2521 = vmatpush3.bf16.msra.mxu1 %v3111_v51  ;;  %2524 = vmatprep.mubr.msk.bf16.mxu1 %vm2882_vm0, %v2881_v0  ;;  %v525_v35 = vpack.c.bf16 %v524_v34, %v524_v34  ;;  %v2267_v51 = vld [vmem:[%s3310_s4 + $0x2] ss:$0 sm:$0xff] }
 0x776   :  { %2522 = vmatprep.subr.bf16.mxu1 %v2881_v0 }
 0x779   :  { %2523 = vmatpush3.bf16.msra.mxu1 %v3116_v55 }
 0x77a   :  { %2536 = vmatprep.subr.bf16.mxu1 %v2881_v0 }
 0x77c   :  { %2525 = vmatmul.mubr.msk.bf16.vlgmr.msra.gmra.mrb[32].mxu1 %vm140_vm1, %v525_v35 }
 0x77d   :  { %2540 = vmatprep.mubr.msk.bf16.mxu1 %vm2882_vm0, %v2881_v0  ;;  %2537 = vmatpush3.bf16.msra.mxu1 %v2684_v36 }
 0x77e   :  { %2538 = vmatprep.subr.bf16.mxu1 %v2881_v0 }
 0x781   :  { %2539 = vmatpush3.bf16.msra.mxu1 %v2685_v37 }
 0x782   :  { %2552 = vmatprep.subr.bf16.mxu1 %v2881_v0 }
 0x784   :  { %2541 = vmatmul.mubr.msk.bf16.vlgmr.msra.gmra.mrb[36].mxu1 %vm140_vm1, %v3016_v7 }
 0x785   :  { %2554 = vmatprep.mubr.msk.bf16.mxu1 %vm2882_vm0, %v2881_v0 }
 0x800   :  { %v1005_v19 = vpop.xlane.xlu1 %1004 }
 0x801   :  { %2714 = vrcp.f32 %v1005_v19  ;;  %v2690_v19 = vld [vmem:[#allocation10 + $0x20] sm:$0xff]  }
 0x80b   :  { %v2715_v38 = vpop.eup %2714 }
 0x847   :  { %v1049_v39 = vpop.f32.mrb[28].mxu1 }
 0x848   :  { %v1056_v40 = vmul.f32 %v2715_v38, %v1049_v39  ;;  %v2510_v41 = vpop.f32.mrb[29].mxu1  ;;  %v2691_v38 = vld [vmem:[#allocation10 + $0x28] sm:$0xff]  }
 0x849   :  { %v1052_v42 = vpop.f32.mrb[30].mxu1 }
 0x84a   :  { %v1057_v44 = vpack.c.bf16 %v1056_v40, %v1056_v40  ;;  %v2511_v45 = vpop.f32.mrb[31].mxu1 }
 0x84c   :  { %2517 = vmatmul.mubr.msk.bf16.vlgmr.msra.gmra.mrb[32].mxu0 %vm140_vm1, %v1057_v44 }
 0x84d   :  { %2529 = vmatpush3.bf16.msra.mxu0 %v2686_v43  ;;  %2532 = vmatprep.mubr.msk.bf16.mxu0 %vm2882_vm0, %v2881_v0 }
 0x84e   :  { %2530 = vmatprep.subr.bf16.mxu0 %v2881_v0 }
 0x84f   :  { %v1138_v47 = vpop.f32.mrb[32].mxu1 }
 0x850   :  { %v2526_v48 = vpop.f32.mrb[33].mxu1 }
 0x851   :  { %v1141_v49 = vpop.f32.mrb[34].mxu1  ;;  %2531 = vmatpush3.bf16.msra.mxu0 %v2687_v46 }
 0x852   :  { %v2527_v50 = vpop.f32.mrb[35].mxu1  ;;  %2544 = vmatprep.subr.bf16.mxu0 %v2881_v0 }
 0x854   :  { %2533 = vmatmul.mubr.msk.bf16.vlgmr.msra.gmra.mrb[36].mxu0 %vm140_vm1, %v3016_v7 }
 0x855   :  { %2548 = vmatprep.mubr.msk.bf16.mxu0 %vm2882_vm0, %v2881_v0  ;;  %2545 = vmatpush3.bf16.msra.mxu0 %v2688_v60 }
 0x856   :  { %2546 = vmatprep.subr.bf16.mxu0 %v2881_v0 }
 0x857   :  { %v1280_v52 = vpop.f32.mrb[36].mxu1 }
 0x858   :  { %v1281_v53 = vadd.f32 %v2267_v51, %v1280_v52  ;;  %v2542_v54 = vpop.f32.mrb[37].mxu1 }
 0x859   :  { %v1283_v55 = vpop.f32.mrb[38].mxu1  ;;  %2547 = vmatpush3.bf16.msra.mxu0 %v2689_v61 }
 0x85a   :  { %v1284_v56 = vadd.f32 %v2267_v51, %v1283_v55  ;;  %v2543_v57 = vpop.f32.mrb[39].mxu1  ;;  %2558 = vmatprep.subr.bf16.mxu0 %v2881_v0 }
 0x85c   :  { %v1287_v58 = vpack.c.bf16 %v1284_v56, %v1281_v53  ;;  %2549 = vmatmul.mubr.msk.bf16.vlgmr.msra.gmra.mrb[40].mxu0 %vm140_vm1, %v3016_v7 }
 0x85d   :  { %2560 = vmatprep.mubr.msk.bf16.mxu0 %vm2882_vm0, %v2881_v0 }
 0x85e   :  { %v1354_v59 = vsel %vm140_vm1, %v1287_v58, 0  ;;  %v1514_v32 = vrot.slane %v1287_v58, 4 }
 0x85f   :  { %2553 = vmatpush3.bf16.xpose.msra.mxu1 %v1354_v59 }
 0x860   :  { %2564 = vmatprep.subr.bf16.mxu1 %v2881_v0  ;;  %v1519_v36 = vsel %vm140_vm1, %v1514_v32, 0  ;;  %v2290_v32 = vld [vmem:[%s3310_s4 + $0x3] ss:$0 sm:$0xff] }
 0x91f   :  { %v1095_v62 = vpop.f32.mrb[32].mxu0 }
 0x920   :  { %v3183_v63 = vadd.f32 %v1138_v47, %v1095_v62  ;;  %v2518_v1 = vpop.f32.mrb[33].mxu0 }
 0x921   :  { %v1098_v2 = vpop.f32.mrb[34].mxu0 }
 0x922   :  { %v2519_v3 = vpop.f32.mrb[35].mxu0 }
 0x923   :  { %v2694_v3 = vld [vmem:[#allocation5 + $0x30] sm:$0xff]  }
 0x927   :  { %v1218_v5 = vpop.f32.mrb[36].mxu0 }
 0x928   :  { %v2534_v6 = vpop.f32.mrb[37].mxu0  ;;  %v1219_v9 = vadd.f32 %v2262_v4, %v1218_v5 }
 0x929   :  { %v1221_v8 = vpop.f32.mrb[38].mxu0 }
 0x92a   :  { %v1222_v10 = vadd.f32 %v2262_v4, %v1221_v8  ;;  %v2535_v11 = vpop.f32.mrb[39].mxu0  ;;  %v2695_v4 = vld [vmem:[#allocation5 + $0x38] sm:$0xff]  }
 0x92b   :  { %v2692_v11 = vld [vmem:[#allocation7 + $0x30] sm:$0xff]  }
 0x92c   :  { %v1225_v13 = vpack.c.bf16 %v1222_v10, %v1219_v9 }
 0x92e   :  { %2555 = vmatmul.mubr.msk.bf16.vlgmr.msra.gmra.mrb[40].mxu1 %vm140_vm1, %v1225_v13  ;;  %v1512_v37 = vrot.slane %v1225_v13, 4 }
 0x92f   :  { %2568 = vmatprep.mubr.msk.bf16.mxu1 %vm2882_vm0, %v2881_v0  ;;  %v1342_v14 = vpop.f32.mrb[40].mxu0  ;;  %2565 = vmatpush3.bf16.msra.mxu1 %v2690_v19 }
 0x930   :  { %v2550_v15 = vpop.f32.mrb[41].mxu0  ;;  %v1343_v23 = vadd.f32 %v2272_v12, %v1342_v14  ;;  %2566 = vmatprep.subr.bf16.mxu1 %v2881_v0 }
 0x931   :  { %v1345_v24 = vpop.f32.mrb[42].mxu0  ;;  %v2693_v15 = vld [vmem:[#allocation7 + $0x38] sm:$0xff]  }
 0x932   :  { %v2551_v25 = vpop.f32.mrb[43].mxu0  ;;  %v1346_v26 = vadd.f32 %v2272_v12, %v1345_v24 }
 0x933   :  { %2567 = vmatpush3.bf16.msra.mxu1 %v2691_v38  ;;  %v2696_v25 = vld [vmem:[#allocation8 + $0x30] sm:$0xff]  }
 0x934   :  { %v1349_v27 = vpack.c.bf16 %v1346_v26, %v1343_v23  ;;  %2578 = vmatprep.subr.bf16.mxu1 %v2881_v0  ;;  %v2697_v26 = vld [vmem:[#allocation8 + $0x38] sm:$0xff]  }
 0x936   :  { %v1410_v28 = vsel %vm368_vm3, %v1349_v27, 0  ;;  %v1572_v42 = vrot.slane %v1349_v27, 4 }
 0x937   :  { %2559 = vmatpush3.bf16.msra.mxu0 %v1410_v28 }
 0x938   :  { %2572 = vmatprep.subr.bf16.mxu0 %v2881_v0  ;;  %v1577_v48 = vsel %vm368_vm3, %v1572_v42, 0 }
 0xa01   :  { %v1390_v16 = vpop.f32.mrb[40].mxu1 }
 0xa02   :  { %v2556_v18 = vpop.f32.mrb[41].mxu1  ;;  %v1396_v20 = vsel %vm354_vm2, %v1390_v16, -inf }
 0xa03   :  { %1397 = vmax.xlane.f32.xlu0 %v1396_v20  ;;  %v1393_v21 = vpop.f32.mrb[42].mxu1  ;;  %v2285_v18 = vld [vmem:[%s3308_s2 + $0x3] ss:$0 sm:$0xff] }
 0xa04   :  { %v2557_v22 = vpop.f32.mrb[43].mxu1 }
 0xa90   :  { %v1398_v29 = vpop.xlane.xlu0 %1397 }
 0xa91   :  { %v1399_v30 = vsub.f32 %v1390_v16, %v1398_v29 }
 0xa93   :  { %v1400_v31 = vmul.f32 1.442695, %v1399_v30 }
 0xa95   :  { %2716 = vpow2.f32 %v1400_v31 }
 0xa9f   :  { %v2717_v33 = vpop.eup %2716 }
 0xaa0   :  { %v1402_v34 = vsel %vm354_vm2, %v2717_v33, 0.0  ;;  %v1405_v35 = vpack.c.bf16 %v2717_v33, %v2717_v33 }
 0xaa1   :  { %1403 = vadd.xlane.f32.xlu1 %v1402_v34 }
 0xaa2   :  { %2561 = vmatmul.mubr.msk.bf16.vlgmr.msra.gmra.mrb[44].mxu0 %vm354_vm2, %v1405_v35 }
 0xaa3   :  { %2573 = vmatpush3.bf16.xpose.msra.mxu0 %v1519_v36  ;;  %2574 = vmatprep.mubr.msk.bf16.mxu0 %vm2882_vm0, %v2881_v0 }
 0xaa4   :  { %2584 = vmatprep.subr.bf16.mxu0 %v2881_v0 }
 0xaaa   :  { %2575 = vmatmul.mubr.msk.bf16.vlgmr.msra.gmra.mrb[48].mxu0 %vm140_vm1, %v1512_v37 }
 0xaab   :  { %2588 = vmatprep.mubr.msk.bf16.mxu0 %vm2882_vm0, %v2881_v0  ;;  %2585 = vmatpush3.bf16.msra.mxu0 %v2690_v19 }
 0xaac   :  { %2586 = vmatprep.subr.bf16.mxu0 %v2881_v0 }
 0xaaf   :  { %2587 = vmatpush3.bf16.msra.mxu0 %v2691_v38 }
 0xab0   :  { %2600 = vmatprep.subr.bf16.mxu0 %v2881_v0 }
 0xb2e   :  { %v1404_v39 = vpop.xlane.xlu1 %1403 }
 0xb2f   :  { %2718 = vrcp.f32 %v1404_v39 }
 0xb39   :  { %v2719_v40 = vpop.eup %2718 }
 0xb75   :  { %v1446_v41 = vpop.f32.mrb[44].mxu0 }
 0xb76   :  { %v1453_v43 = vmul.f32 %v2719_v40, %v1446_v41  ;;  %v2562_v44 = vpop.f32.mrb[45].mxu0 }
 0xb77   :  { %v1449_v45 = vpop.f32.mrb[46].mxu0 }
 0xb78   :  { %v1454_v46 = vpack.c.bf16 %v1453_v43, %v1453_v43  ;;  %v2563_v47 = vpop.f32.mrb[47].mxu0  ;;  %v2295_v45 = vld [vmem:[%s3312_s6 + $0x3] ss:$0 sm:$0xff] }
 0xb7a   :  { %2569 = vmatmul.mubr.msk.bf16.vlgmr.msra.gmra.mrb[44].mxu1 %vm140_vm1, %v1454_v46 }
 0xb7b   :  { %2579 = vmatpush3.bf16.msra.mxu1 %v1577_v48  ;;  %2580 = vmatprep.mubr.msk.bf16.mxu1 %vm2882_vm0, %v2881_v0 }
 0xb7c   :  { %2592 = vmatprep.subr.bf16.mxu1 %v2881_v0 }
 0xb7d   :  { %v1555_v49 = vpop.f32.mrb[48].mxu0 }
 0xb7e   :  { %v2576_v50 = vpop.f32.mrb[49].mxu0  ;;  %v1561_v51 = vsel %vm354_vm2, %v1555_v49, -inf }
 0xb7f   :  { %1562 = vmax.xlane.f32.xlu0 %v1561_v51  ;;  %v1558_v52 = vpop.f32.mrb[50].mxu0 }
 0xb80   :  { %v2577_v53 = vpop.f32.mrb[51].mxu0 }
 0xc0c   :  { %v1563_v54 = vpop.xlane.xlu0 %1562 }
 0xc0d   :  { %v1564_v55 = vsub.f32 %v1555_v49, %v1563_v54 }
 0xc0f   :  { %v1565_v56 = vmul.f32 1.442695, %v1564_v55 }
 0xc11   :  { %2720 = vpow2.f32 %v1565_v56 }
 0xc1b   :  { %v2721_v57 = vpop.eup %2720 }
 0xc1c   :  { %v1567_v58 = vsel %vm354_vm2, %v2721_v57, 0.0  ;;  %v1570_v59 = vpack.c.bf16 %v2721_v57, %v2721_v57 }
 0xc1d   :  { %1568 = vadd.xlane.f32.xlu1 %v1567_v58 }
 0xc1e   :  { %2581 = vmatmul.mubr.msk.bf16.vlgmr.msra.gmra.mrb[48].mxu1 %vm354_vm2, %v1570_v59 }
 0xc1f   :  { %2596 = vmatprep.mubr.msk.bf16.mxu1 %vm2882_vm0, %v2881_v0  ;;  %2593 = vmatpush3.bf16.msra.mxu1 %v2694_v3 }
 0xc20   :  { %2594 = vmatprep.subr.bf16.mxu1 %v2881_v0 }
 0xc23   :  { %2595 = vmatpush3.bf16.msra.mxu1 %v2695_v4 }
 0xc24   :  { %2608 = vmatprep.subr.bf16.mxu1 %v2881_v0 }
 0xc26   :  { %2597 = vmatmul.mubr.msk.bf16.vlgmr.msra.gmra.mrb[52].mxu1 %vm140_vm1, %v3016_v7 }
 0xc27   :  { %2612 = vmatprep.mubr.msk.bf16.mxu1 %vm2882_vm0, %v2881_v0  ;;  %2609 = vmatpush3.bf16.msra.mxu1 %v2696_v25 }
 0xc28   :  { %2610 = vmatprep.subr.bf16.mxu1 %v2881_v0 }
 0xc2b   :  { %2611 = vmatpush3.bf16.msra.mxu1 %v2697_v26 }
 0xc2c   :  { %2622 = vmatprep.subr.bf16.mxu1 %v2881_v0 }
 0xc2e   :  { %2613 = vmatmul.mubr.msk.bf16.vlgmr.msra.gmra.mrb[56].mxu1 %vm140_vm1, %v3016_v7 }
 0xc2f   :  { %2624 = vmatprep.mubr.msk.bf16.mxu1 %vm2882_vm0, %v2881_v0 }
 0xc4d   :  { %v1504_v60 = vpop.f32.mrb[44].mxu1 }
 0xc4e   :  { %v3221_v61 = vadd.f32 %v1504_v60, %v3142_v17  ;;  %v2570_v62 = vpop.f32.mrb[45].mxu1 }
 0xc4f   :  { %v1507_v1 = vpop.f32.mrb[46].mxu1  ;;  %v2698_v62 = vld [vmem:[#allocation10 + $0x30] sm:$0xff]  }
 0xc50   :  { %v2571_v2 = vpop.f32.mrb[47].mxu1  ;;  %v2699_v1 = vld [vmem:[#allocation10 + $0x38] sm:$0xff]  }
 0xcaa   :  { %v1569_v5 = vpop.xlane.xlu1 %1568 }
 0xcab   :  { %2722 = vrcp.f32 %v1569_v5 }
 0xcb5   :  { %v2723_v17 = vpop.eup %2722 }
 0xcf1   :  { %v1613_v6 = vpop.f32.mrb[48].mxu1 }
 0xcf2   :  { %v1620_v8 = vmul.f32 %v2723_v17, %v1613_v6  ;;  %v2582_v9 = vpop.f32.mrb[49].mxu1 }
 0xcf3   :  { %v1616_v10 = vpop.f32.mrb[50].mxu1 }
 0xcf4   :  { %v1621_v13 = vpack.c.bf16 %v1620_v8, %v1620_v8  ;;  %v2583_v14 = vpop.f32.mrb[51].mxu1 }
 0xcf6   :  { %2589 = vmatmul.mubr.msk.bf16.vlgmr.msra.gmra.mrb[52].mxu0 %vm140_vm1, %v1621_v13 }
 0xcf7   :  { %2601 = vmatpush3.bf16.msra.mxu0 %v2692_v11  ;;  %2604 = vmatprep.mubr.msk.bf16.mxu0 %vm2882_vm0, %v2881_v0 }
 0xcf8   :  { %2602 = vmatprep.subr.bf16.mxu0 %v2881_v0 }
 0xcf9   :  { %v1740_v16 = vpop.f32.mrb[52].mxu1 }
 0xcfa   :  { %v2598_v20 = vpop.f32.mrb[53].mxu1  ;;  %v1741_v21 = vadd.f32 %v2285_v18, %v1740_v16 }
 0xcfb   :  { %2603 = vmatpush3.bf16.msra.mxu0 %v2693_v15  ;;  %v1743_v22 = vpop.f32.mrb[54].mxu1 }
 0xcfc   :  { %2616 = vmatprep.subr.bf16.mxu0 %v2881_v0  ;;  %v1744_v12 = vadd.f32 %v2285_v18, %v1743_v22  ;;  %v2599_v23 = vpop.f32.mrb[55].mxu1 }
 0xcfe   :  { %2605 = vmatmul.mubr.msk.bf16.vlgmr.msra.gmra.mrb[56].mxu0 %vm140_vm1, %v3016_v7  ;;  %v1747_v24 = vpack.c.bf16 %v1744_v12, %v1741_v21 }
 0xcff   :  { %2618 = vmatprep.mubr.msk.bf16.mxu0 %vm2882_vm0, %v2881_v0 }
 0xd00   :  { %v2034_v60 = vrot.slane %v1747_v24, 4 }
 0xdc9   :  { %v1659_v27 = vpop.f32.mrb[52].mxu0 }
 0xdca   :  { %v3248_v28 = vadd.f32 %v1659_v27, %v3183_v63  ;;  %v2590_v29 = vpop.f32.mrb[53].mxu0  ;;  %v1864_v63 = vpop.f32.mrb[56].mxu1 }
 0xdcb   :  { %v1662_v30 = vpop.f32.mrb[54].mxu0  ;;  %v2614_v39 = vpop.f32.mrb[57].mxu1  ;;  %v1865_v46 = vadd.f32 %v2295_v45, %v1864_v63 }
 0xdcc   :  { %v2591_v31 = vpop.f32.mrb[55].mxu0  ;;  %v1867_v47 = vpop.f32.mrb[58].mxu1 }
 0xdcd   :  { %v2615_v48 = vpop.f32.mrb[59].mxu1  ;;  %v1868_v49 = vadd.f32 %v2295_v45, %v1867_v47 }
 0xdcf   :  { %v1871_v50 = vpack.c.bf16 %v1868_v49, %v1865_v46 }
 0xdd1   :  { %v1802_v33 = vpop.f32.mrb[56].mxu0  ;;  %v1932_v51 = vsel %vm368_vm3, %v1871_v50, 0  ;;  %v2094_v5 = vrot.slane %v1871_v50, 4 }
 0xdd2   :  { %v2606_v34 = vpop.f32.mrb[57].mxu0  ;;  %v1803_v36 = vadd.f32 %v2290_v32, %v1802_v33  ;;  %2623 = vmatpush3.bf16.msra.mxu1 %v1932_v51 }
 0xdd3   :  { %v1805_v35 = vpop.f32.mrb[58].mxu0  ;;  %2636 = vmatprep.subr.bf16.mxu1 %v2881_v0  ;;  %v2099_v11 = vsel %vm368_vm3, %v2094_v5, 0 }
 0xdd4   :  { %v1806_v37 = vadd.f32 %v2290_v32, %v1805_v35  ;;  %v2607_v7 = vpop.f32.mrb[59].mxu0 }
 0xdd6   :  { %v1809_v19 = vpack.c.bf16 %v1806_v37, %v1803_v36 }
 0xdd8   :  { %v1876_v38 = vsel %vm140_vm1, %v1809_v19, 0  ;;  %v2036_v55 = vrot.slane %v1809_v19, 4 }
 0xdd9   :  { %2617 = vmatpush3.bf16.xpose.msra.mxu0 %v1876_v38 }
 0xdda   :  { %2628 = vmatprep.subr.bf16.mxu0 %v2881_v0  ;;  %v2041_v59 = vsel %vm140_vm1, %v2036_v55, 0 }
 0xde0   :  { %2619 = vmatmul.mubr.msk.bf16.vlgmr.msra.gmra.mrb[60].mxu0 %vm140_vm1, %v1747_v24 }
 0xde1   :  { %2632 = vmatprep.mubr.msk.bf16.mxu0 %vm2882_vm0, %v2881_v0  ;;  %2629 = vmatpush3.bf16.msra.mxu0 %v2698_v62 }
 0xde2   :  { %2630 = vmatprep.subr.bf16.mxu0 %v2881_v0 }
 0xde5   :  { %2631 = vmatpush3.bf16.msra.mxu0 %v2699_v1 }
 0xde6   :  { %2642 = vmatprep.subr.bf16.mxu0 %v2881_v0 }
 0xeb3   :  { %v1912_v40 = vpop.f32.mrb[60].mxu0 }
 0xeb4   :  { %v2620_v41 = vpop.f32.mrb[61].mxu0  ;;  %v1918_v42 = vsel %vm354_vm2, %v1912_v40, -inf }
 0xeb5   :  { %1919 = vmax.xlane.f32.xlu0 %v1918_v42  ;;  %v1915_v43 = vpop.f32.mrb[62].mxu0 }
 0xeb6   :  { %v2621_v44 = vpop.f32.mrb[63].mxu0 }
 0xf42   :  { %v1920_v52 = vpop.xlane.xlu0 %1919 }
 0xf43   :  { %v1921_v53 = vsub.f32 %v1912_v40, %v1920_v52 }
 0xf45   :  { %v1922_v54 = vmul.f32 1.442695, %v1921_v53 }
 0xf47   :  { %2724 = vpow2.f32 %v1922_v54 }
 0xf51   :  { %v2725_v56 = vpop.eup %2724 }
 0xf52   :  { %v1924_v57 = vsel %vm354_vm2, %v2725_v56, 0.0  ;;  %v1927_v58 = vpack.c.bf16 %v2725_v56, %v2725_v56 }
 0xf53   :  { %1925 = vadd.xlane.f32.xlu1 %v1924_v57 }
 0xf54   :  { %2625 = vmatmul.mubr.msk.bf16.vlgmr.msra.gmra.mrb[60].mxu1 %vm354_vm2, %v1927_v58 }
 0xf55   :  { %2637 = vmatpush3.bf16.xpose.msra.mxu1 %v2041_v59  ;;  %2638 = vmatprep.mubr.msk.bf16.mxu1 %vm2882_vm0, %v2881_v0 }
 0xf56   :  { %2648 = vmatprep.subr.bf16.mxu1 %v2881_v0 }
 0xf5c   :  { %2639 = vmatmul.mubr.msk.bf16.vlgmr.msra.gmra.mrb[64].mxu1 %vm140_vm1, %v2034_v60 }
 0xf5d   :  { %2652 = vmatprep.mubr.msk.bf16.mxu1 %vm2882_vm0, %v2881_v0  ;;  %2649 = vmatpush3.bf16.msra.mxu1 %v2698_v62 }
 0xf5e   :  { %2650 = vmatprep.subr.bf16.mxu1 %v2881_v0 }
 0xf61   :  { %2651 = vmatpush3.bf16.msra.mxu1 %v2699_v1 }
 0xfe0   :  { %v1926_v2 = vpop.xlane.xlu1 %1925 }
 0xfe1   :  { %2726 = vrcp.f32 %v1926_v2 }
 0xfeb   :  { %v2727_v3 = vpop.eup %2726 }
0x1027   :  { %v1968_v4 = vpop.f32.mrb[60].mxu1 }
0x1028   :  { %v1975_v17 = vmul.f32 %v2727_v3, %v1968_v4  ;;  %v2626_v6 = vpop.f32.mrb[61].mxu1 }
0x1029   :  { %v1971_v8 = vpop.f32.mrb[62].mxu1 }
0x102a   :  { %v1976_v9 = vpack.c.bf16 %v1975_v17, %v1975_v17  ;;  %v2627_v10 = vpop.f32.mrb[63].mxu1 }
0x102c   :  { %2633 = vmatmul.mubr.msk.bf16.vlgmr.msra.gmra.mrb[64].mxu0 %vm140_vm1, %v1976_v9 }
0x102d   :  { %2643 = vmatpush3.bf16.msra.mxu0 %v2099_v11  ;;  %2644 = vmatprep.mubr.msk.bf16.mxu0 %vm2882_vm0, %v2881_v0  ;;  %v2307_v0 = vld [vmem:[%s3314_s8] ss:$0 sm:$0xff]  ;;  %s2883_s8 = smov [#allocation11]  }
0x102e   :  { %s2204_s30 = sshll.u32 %s2883_s8, 4  ;;  %s2205_s30 = int_to_ptr.vmem [resolvable:$true] %s2204_s30 }
0x102f   :  { %v2077_v13 = vpop.f32.mrb[64].mxu1  ;;  %s2842_s7 = scalar_lea.vmem %s2205_s30, 256  ;;  %p2847_p13 = scmp.lt.s32.totalorder %s2205_s30, %s2205_s30 }
0x1030   :  { %v2640_v14 = vpop.f32.mrb[65].mxu1  ;;  %v2083_v15 = vsel %vm354_vm2, %v2077_v13, -inf  ;;  %p2843_p12 = scmp.ne.s32.totalorder %s2205_s30, %s2842_s7  ;;  %p2848_p0 = scmp.lt.s32.totalorder %s2842_s7, %s2842_s7 }
0x1031   :  { %2084 = vmax.xlane.f32.xlu0 %v2083_v15  ;;  %v2080_v16 = vpop.f32.mrb[66].mxu1 }
0x1032   :  { %v2641_v18 = vpop.f32.mrb[67].mxu1  ;;  %p2849_p1 = por %p2848_p0, %p2847_p13 }
0x1034   :  { %p2850_p2 = pnand %p2849_p1, %p2843_p12 }
0x10be   :  { %v2085_v20 = vpop.xlane.xlu0 %2084 }
0x10bf   :  { %v2086_v21 = vsub.f32 %v2077_v13, %v2085_v20 }
0x10c1   :  { %v2087_v22 = vmul.f32 1.442695, %v2086_v21 }
0x10c3   :  { %2728 = vpow2.f32 %v2087_v22 }
0x10cd   :  { %v2729_v12 = vpop.eup %2728 }
0x10ce   :  { %v2089_v23 = vsel %vm354_vm2, %v2729_v12, 0.0  ;;  %v2092_v24 = vpack.c.bf16 %v2729_v12, %v2729_v12 }
0x10cf   :  { %2090 = vadd.xlane.f32.xlu1 %v2089_v23 }
0x10d0   :  { %2645 = vmatmul.mubr.msk.bf16.vlgmr.msra.gmra.mrb[68].mxu0 %vm354_vm2, %v2092_v24 }
0x10ff   :  { %v2026_v25 = vpop.f32.mrb[64].mxu0 }
0x1100   :  { %v2032_v26 = vadd.f32 %v2026_v25, %v3221_v61  ;;  %v2634_v27 = vpop.f32.mrb[65].mxu0 }
0x1101   :  { %v2029_v29 = vpop.f32.mrb[66].mxu0 }
0x1102   :  { %v2195_v30 = vadd.f32 %v2307_v0, %v2032_v26  ;;  %v2635_v31 = vpop.f32.mrb[67].mxu0 }
0x1104   :  { %2196 = vst.msk [vmem:[#allocation11] sm:$0xff] %vm140_vm1, %v2195_v30 }
0x115c   :  { %v2091_v32 = vpop.xlane.xlu1 %2090 }
0x115d   :  { %2730 = vrcp.f32 %v2091_v32 }
0x1167   :  { %v2731_v33 = vpop.eup %2730 }
0x11a3   :  { %v2135_v34 = vpop.f32.mrb[68].mxu0 }
0x11a4   :  { %v2142_v35 = vmul.f32 %v2731_v33, %v2135_v34  ;;  %v2646_v36 = vpop.f32.mrb[69].mxu0 }
0x11a5   :  { %v2138_v37 = vpop.f32.mrb[70].mxu0 }
0x11a6   :  { %v2143_v7 = vpack.c.bf16 %v2142_v35, %v2142_v35  ;;  %v2647_v19 = vpop.f32.mrb[71].mxu0 }
0x11a8   :  { %2653 = vmatmul.mubr.msk.bf16.vlgmr.msra.gmra.mrb[68].mxu1 %vm140_vm1, %v2143_v7 }
0x127b   :  { %v2181_v38 = vpop.f32.mrb[68].mxu1 }
0x127c   :  { %v2187_v61 = vadd.f32 %v2181_v38, %v3248_v28  ;;  %v2654_v63 = vpop.f32.mrb[69].mxu1 }
0x127d   :  { %v2184_v39 = vpop.f32.mrb[70].mxu1 }
0x127e   :  { %v2197_v40 = vadd.f32 %v2307_v0, %v2187_v61  ;;  %v2655_v41 = vpop.f32.mrb[71].mxu1 }
0x1280   :  { %2198 = vst.msk [vmem:[#allocation11 + $0x8] sm:$0xff] %vm140_vm1, %v2197_v40 }
0x1281   :  { %2853 = shalt.err (!%p2850_p2)
}
0x1282   :  { %s2854_s12 = scalar_lea.hbm %s3315_s9, 256 }
0x1283   :  { %p2855_p3 = scmp.ne.s32.totalorder %s3315_s9, %s2854_s12  ;;  %p2858_p4 = scmp.lt.u32.totalorder %s2854_s12, %s3315_s9 }
0x1285   :  { %p2860_p5 = pnand %p2858_p4, %p2855_p3 }
0x1287   :  { %2863 = shalt.err (!%p2860_p5)
}
0x1288   :  { %2210 = dma.vmem_to_hbm [thread:$0]  %s2205_s30, 256, %s3315_s9, [#allocation4], %s2877_s5, %s2877_s5, %s2878_s24  }
0x1289   :  { %2870 = dma.done.wait [#allocation4], 256  }
0x128a   :  { %2871 = vsyncadd [#allocation4], 4294967040 }
0x128b   :  { %2214 = vsyncpa [#allocation3], 1 }
0x128c   :  { %2215 = vsyncpa [#allocation6], 1 }
0x128d   :  { %2216 = vsyncpa [#allocation9], 1 }
0x128e   :  { %2217 = vsyncpa [#allocation4], 1 }

</bundles_post_ra>
